<compile_context>
chip_gen: v7x
topology: tpu7x:2x2x1
jax: 0.10.0
libtpu: 0.0.40
codegen_flags: <defaults>
</compile_context>

<pallas_src>
import jax
import jax.numpy as jnp
from jax.experimental import pallas as pl
from jax.experimental.pallas import tpu as pltpu

NUM_LAYERS = 8


# ----------------------------------------------------------------------------
# Fused kernel: 8 x ( relu/sigmoid( (adj @ x) @ W_l + b_l ) ), all in VMEM.
# ----------------------------------------------------------------------------
def fused_gcn_kernel(adj_ref, x_ref, w_ref, b_ref, o_ref):
    # adj_ref: [N, N] bf16   x_ref: [N, H] f32 (zero-padded features)
    # w_ref:   [L, H, H] f32 (zero-padded)     b_ref: [L, 1, H] f32
    # o_ref:   [N, H] f32 (padded output slab; wrapper slices real channels)
    adj = adj_ref[...]                                   # [N, N] bf16
    x = x_ref[...]                                       # [N, H] f32
    for layer in range(NUM_LAYERS):                      # fully unrolled
        # Neighbor aggregation on the MXU: bf16 inputs, f32 accumulation.
        agg = jnp.dot(adj, x.astype(jnp.bfloat16),
                      preferred_element_type=jnp.float32)        # [N, H] f32
        # Linear transform + bias, kept in f32 for accuracy.
        y = jnp.dot(agg, w_ref[layer],
                    preferred_element_type=jnp.float32) + b_ref[layer]
        if layer < NUM_LAYERS - 1:
            x = jnp.maximum(y, 0.0)                      # relu
        else:
            x = jax.nn.sigmoid(y)                        # final activation
    o_ref[...] = x


def graph_conv_net_forward(adj_hat, features, params):
    n = adj_hat.shape[0]
    hidden = params[0][0].shape[1]          # 64
    out_channels = params[-1][0].shape[1]   # 6
    assert len(params) == NUM_LAYERS

    # Zero-pad + stack parameters to uniform [L, H, H] / [L, 1, H].
    w_stack = jnp.stack([
        jnp.pad(w, ((0, hidden - w.shape[0]), (0, hidden - w.shape[1])))
        for w, _ in params
    ]).astype(jnp.float32)
    b_stack = jnp.stack([
        jnp.pad(b, (0, hidden - b.shape[0])).reshape(1, hidden)
        for _, b in params
    ]).astype(jnp.float32)

    # Zero-pad input features to the hidden width (exact: padded columns hit
    # zero-padded weight rows of layer 0).
    x_pad = jnp.pad(features.astype(jnp.float32),
                    ((0, 0), (0, hidden - features.shape[1])))
    adj_bf16 = adj_hat.astype(jnp.bfloat16)

    flops = 2 * NUM_LAYERS * (n * n * hidden + n * hidden * hidden)
    bytes_accessed = (adj_bf16.size * 2 + x_pad.size * 4 + w_stack.size * 4
                      + b_stack.size * 4 + n * hidden * 4)

    out_pad = pl.pallas_call(
        fused_gcn_kernel,
        out_shape=jax.ShapeDtypeStruct((n, hidden), jnp.float32),
        in_specs=[
            pl.BlockSpec(memory_space=pltpu.MemorySpace.VMEM),  # adj
            pl.BlockSpec(memory_space=pltpu.MemorySpace.VMEM),  # features
            pl.BlockSpec(memory_space=pltpu.MemorySpace.VMEM),  # weights
            pl.BlockSpec(memory_space=pltpu.MemorySpace.VMEM),  # biases
        ],
        out_specs=pl.BlockSpec(memory_space=pltpu.MemorySpace.VMEM),
        cost_estimate=pl.CostEstimate(
            flops=flops,
            transcendentals=n * hidden,        # final sigmoid
            bytes_accessed=bytes_accessed),
    )(adj_bf16, x_pad, w_stack, b_stack)

    # TODO(synk): training-mode dropout (p=0.25) not implemented; the module
    # is evaluated with train=False, where dropout is the identity.
    return out_pad[:, :out_channels]


# ----------------------------------------------------------------------------
# Parameter init (Glorot uniform weights, zero bias — DGL defaults) and
# host-side graph normalization.
# ----------------------------------------------------------------------------
def glorot_uniform(key, shape):
    fan_in, fan_out = shape
    limit = jnp.sqrt(6.0 / (fan_in + fan_out))
    return jax.random.uniform(key, shape, jnp.float32, -limit, limit)


def init_params(key, in_channels=3, hidden=64, out_channels=6):
    dims = [in_channels] + [hidden] * 7 + [out_channels]
    params = []
    for i in range(len(dims) - 1):
        key, wk = jax.random.split(key)
        w = glorot_uniform(wk, (dims[i], dims[i + 1]))
        b = jnp.zeros((dims[i + 1],), jnp.float32)
        params.append((w, b))
    return params


def normalized_adjacency(a):
    # a[s, d] = 1.0 iff edge s -> d.  DGL norm='both' with zero-degree clamp.
    out_deg = jnp.maximum(jnp.sum(a, axis=1), 1.0)   # per source node
    in_deg = jnp.maximum(jnp.sum(a, axis=0), 1.0)    # per destination node
    norm_src = out_deg ** -0.5
    norm_dst = in_deg ** -0.5
    # adj_hat[d, s] = norm_dst[d] * a[s, d] * norm_src[s]
    return (norm_dst[:, None] * a.T * norm_src[None, :]).astype(jnp.float32)


# ----------------------------------------------------------------------------
# Pure-JAX references for correctness checks.
# ----------------------------------------------------------------------------
def reference_forward_f32(adj_hat, features, params):
    x = features
    for w, b in params[:-1]:
        x = jnp.maximum(adj_hat @ x @ w + b, 0.0)
    w, b = params[-1]
    return jax.nn.sigmoid(adj_hat @ x @ w + b)


def reference_forward_bf16(adj_hat, features, params):
    # Mirrors the kernel's precision choices (bf16 aggregation operands,
    # f32 accumulation, f32 weights/activations) for a tight check.
    adj = adj_hat.astype(jnp.bfloat16)
    x = features.astype(jnp.float32)
    for i, (w, b) in enumerate(params):
        agg = jnp.dot(adj, x.astype(jnp.bfloat16),
                      preferred_element_type=jnp.float32)
        y = jnp.dot(agg, w, preferred_element_type=jnp.float32) + b
        x = jnp.maximum(y, 0.0) if i < NUM_LAYERS - 1 else jax.nn.sigmoid(y)
    return x


if __name__ == "__main__":
    key = jax.random.PRNGKey(0)
    k_feat, k_edge, k_param = jax.random.split(key, 3)

    n_nodes = 128
    in_channels = 3
    out_channels = 6

    # Deterministic random graph (dense 0/1 adjacency, ~5% edge density).
    a = jax.random.bernoulli(k_edge, p=0.05, shape=(n_nodes, n_nodes))
    a = a.astype(jnp.float32)
    adj_hat = normalized_adjacency(a)

    features = jax.random.normal(k_feat, (n_nodes, in_channels), jnp.float32)
    params = init_params(k_param, in_channels, 64, out_channels)

    out = graph_conv_net_forward(adj_hat, features, params)
    out = jax.block_until_ready(out)
    assert out.shape == (n_nodes, out_channels)

    # Tight check against a reference that mirrors the kernel's bf16/f32 mix.
    ref_bf16 = reference_forward_bf16(adj_hat, features, params)
    assert jnp.allclose(out, ref_bf16, atol=1e-3, rtol=1e-3), (
        "max |diff| vs bf16-mimicking ref: "
        f"{float(jnp.max(jnp.abs(out - ref_bf16)))}")

    # Loose check against the pure-f32 reference (bf16 aggregation rounding is
    # the only deviation from the original fp32 model).
    ref_f32 = reference_forward_f32(adj_hat, features, params)
    assert jnp.allclose(out, ref_f32, atol=5e-2, rtol=5e-2), (
        "max |diff| vs f32 ref: "
        f"{float(jnp.max(jnp.abs(out - ref_f32)))}")

    print("KERNEL_OK")
</pallas_src>

<mosaic_0001>
module attributes {stable_mosaic.version = 11 : i64} {
  func.func @fused_gcn_kernel(%arg0: memref<128x128xbf16, #tpu.memory_space<vmem>>, %arg1: memref<128x64xf32, #tpu.memory_space<vmem>>, %arg2: memref<8x64x64xf32, #tpu.memory_space<vmem>>, %arg3: memref<8x1x64xf32, #tpu.memory_space<vmem>>, %arg4: memref<128x64xf32, #tpu.memory_space<vmem>>) attributes {dimension_semantics = [], scalar_prefetch = 0 : i64, scratch_operands = 0 : i64, tpu.core_type = #tpu.core_type<tc>} {
    %c0 = arith.constant 0 : index
    %c0_0 = arith.constant 0 : index
    %0 = vector.load %arg0[%c0, %c0_0] : memref<128x128xbf16, #tpu.memory_space<vmem>>, vector<128x128xbf16>
    %c0_1 = arith.constant 0 : index
    %c0_2 = arith.constant 0 : index
    %1 = vector.load %arg1[%c0_1, %c0_2] : memref<128x64xf32, #tpu.memory_space<vmem>>, vector<128x64xf32>
    %2 = arith.truncf %1 : vector<128x64xf32> to vector<128x64xbf16>
    %cst = arith.constant dense<0.000000e+00> : vector<128x64xf32>
    %3 = tpu.matmul %0, %2, %cst {dimension_numbers = #tpu.dot_dimension_numbers<[1], [0], [0], [1], [0, 0, 1, 1], [], []>} : vector<128x128xbf16>, vector<128x64xbf16>, vector<128x64xf32> -> vector<128x64xf32>
    %c0_3 = arith.constant 0 : index
    %c0_4 = arith.constant 0 : index
    %c0_5 = arith.constant 0 : index
    %4 = vector.load %arg2[%c0_3, %c0_4, %c0_5] : memref<8x64x64xf32, #tpu.memory_space<vmem>>, vector<1x64x64xf32>
    %5 = vector.shape_cast %4 : vector<1x64x64xf32> to vector<64x64xf32>
    %cst_6 = arith.constant dense<0.000000e+00> : vector<128x64xf32>
    %6 = tpu.matmul %3, %5, %cst_6 {dimension_numbers = #tpu.dot_dimension_numbers<[1], [0], [0], [1], [0, 0, 1, 1], [], []>} : vector<128x64xf32>, vector<64x64xf32>, vector<128x64xf32> -> vector<128x64xf32>
    %c0_7 = arith.constant 0 : index
    %c0_8 = arith.constant 0 : index
    %c0_9 = arith.constant 0 : index
    %7 = vector.load %arg3[%c0_7, %c0_8, %c0_9] : memref<8x1x64xf32, #tpu.memory_space<vmem>>, vector<1x1x64xf32>
    %8 = vector.shape_cast %7 : vector<1x1x64xf32> to vector<1x64xf32>
    %9 = vector.broadcast %8 : vector<1x64xf32> to vector<128x64xf32>
    %10 = arith.addf %6, %9 : vector<128x64xf32>
    %cst_10 = arith.constant 0.000000e+00 : f32
    %11 = vector.broadcast %cst_10 : f32 to vector<128x64xf32>
    %12 = arith.maximumf %10, %11 : vector<128x64xf32>
    %13 = arith.truncf %12 : vector<128x64xf32> to vector<128x64xbf16>
    %cst_11 = arith.constant dense<0.000000e+00> : vector<128x64xf32>
    %14 = tpu.matmul %0, %13, %cst_11 {dimension_numbers = #tpu.dot_dimension_numbers<[1], [0], [0], [1], [0, 0, 1, 1], [], []>} : vector<128x128xbf16>, vector<128x64xbf16>, vector<128x64xf32> -> vector<128x64xf32>
    %c1 = arith.constant 1 : index
    %c0_12 = arith.constant 0 : index
    %c0_13 = arith.constant 0 : index
    %15 = vector.load %arg2[%c1, %c0_12, %c0_13] : memref<8x64x64xf32, #tpu.memory_space<vmem>>, vector<1x64x64xf32>
    %16 = vector.shape_cast %15 : vector<1x64x64xf32> to vector<64x64xf32>
    %cst_14 = arith.constant dense<0.000000e+00> : vector<128x64xf32>
    %17 = tpu.matmul %14, %16, %cst_14 {dimension_numbers = #tpu.dot_dimension_numbers<[1], [0], [0], [1], [0, 0, 1, 1], [], []>} : vector<128x64xf32>, vector<64x64xf32>, vector<128x64xf32> -> vector<128x64xf32>
    %c1_15 = arith.constant 1 : index
    %c0_16 = arith.constant 0 : index
    %c0_17 = arith.constant 0 : index
    %18 = vector.load %arg3[%c1_15, %c0_16, %c0_17] : memref<8x1x64xf32, #tpu.memory_space<vmem>>, vector<1x1x64xf32>
    %19 = vector.shape_cast %18 : vector<1x1x64xf32> to vector<1x64xf32>
    %20 = vector.broadcast %19 : vector<1x64xf32> to vector<128x64xf32>
    %21 = arith.addf %17, %20 : vector<128x64xf32>
    %cst_18 = arith.constant 0.000000e+00 : f32
    %22 = vector.broadcast %cst_18 : f32 to vector<128x64xf32>
    %23 = arith.maximumf %21, %22 : vector<128x64xf32>
    %24 = arith.truncf %23 : vector<128x64xf32> to vector<128x64xbf16>
    %cst_19 = arith.constant dense<0.000000e+00> : vector<128x64xf32>
    %25 = tpu.matmul %0, %24, %cst_19 {dimension_numbers = #tpu.dot_dimension_numbers<[1], [0], [0], [1], [0, 0, 1, 1], [], []>} : vector<128x128xbf16>, vector<128x64xbf16>, vector<128x64xf32> -> vector<128x64xf32>
    %c2 = arith.constant 2 : index
    %c0_20 = arith.constant 0 : index
    %c0_21 = arith.constant 0 : index
    %26 = vector.load %arg2[%c2, %c0_20, %c0_21] : memref<8x64x64xf32, #tpu.memory_space<vmem>>, vector<1x64x64xf32>
    %27 = vector.shape_cast %26 : vector<1x64x64xf32> to vector<64x64xf32>
    %cst_22 = arith.constant dense<0.000000e+00> : vector<128x64xf32>
    %28 = tpu.matmul %25, %27, %cst_22 {dimension_numbers = #tpu.dot_dimension_numbers<[1], [0], [0], [1], [0, 0, 1, 1], [], []>} : vector<128x64xf32>, vector<64x64xf32>, vector<128x64xf32> -> vector<128x64xf32>
    %c2_23 = arith.constant 2 : index
    %c0_24 = arith.constant 0 : index
    %c0_25 = arith.constant 0 : index
    %29 = vector.load %arg3[%c2_23, %c0_24, %c0_25] : memref<8x1x64xf32, #tpu.memory_space<vmem>>, vector<1x1x64xf32>
    %30 = vector.shape_cast %29 : vector<1x1x64xf32> to vector<1x64xf32>
    %31 = vector.broadcast %30 : vector<1x64xf32> to vector<128x64xf32>
    %32 = arith.addf %28, %31 : vector<128x64xf32>
    %cst_26 = arith.constant 0.000000e+00 : f32
    %33 = vector.broadcast %cst_26 : f32 to vector<128x64xf32>
    %34 = arith.maximumf %32, %33 : vector<128x64xf32>
    %35 = arith.truncf %34 : vector<128x64xf32> to vector<128x64xbf16>
    %cst_27 = arith.constant dense<0.000000e+00> : vector<128x64xf32>
    %36 = tpu.matmul %0, %35, %cst_27 {dimension_numbers = #tpu.dot_dimension_numbers<[1], [0], [0], [1], [0, 0, 1, 1], [], []>} : vector<128x128xbf16>, vector<128x64xbf16>, vector<128x64xf32> -> vector<128x64xf32>
    %c3 = arith.constant 3 : index
    %c0_28 = arith.constant 0 : index
    %c0_29 = arith.constant 0 : index
    %37 = vector.load %arg2[%c3, %c0_28, %c0_29] : memref<8x64x64xf32, #tpu.memory_space<vmem>>, vector<1x64x64xf32>
    %38 = vector.shape_cast %37 : vector<1x64x64xf32> to vector<64x64xf32>
    %cst_30 = arith.constant dense<0.000000e+00> : vector<128x64xf32>
    %39 = tpu.matmul %36, %38, %cst_30 {dimension_numbers = #tpu.dot_dimension_numbers<[1], [0], [0], [1], [0, 0, 1, 1], [], []>} : vector<128x64xf32>, vector<64x64xf32>, vector<128x64xf32> -> vector<128x64xf32>
    %c3_31 = arith.constant 3 : index
    %c0_32 = arith.constant 0 : index
    %c0_33 = arith.constant 0 : index
    %40 = vector.load %arg3[%c3_31, %c0_32, %c0_33] : memref<8x1x64xf32, #tpu.memory_space<vmem>>, vector<1x1x64xf32>
    %41 = vector.shape_cast %40 : vector<1x1x64xf32> to vector<1x64xf32>
    %42 = vector.broadcast %41 : vector<1x64xf32> to vector<128x64xf32>
    %43 = arith.addf %39, %42 : vector<128x64xf32>
    %cst_34 = arith.constant 0.000000e+00 : f32
    %44 = vector.broadcast %cst_34 : f32 to vector<128x64xf32>
    %45 = arith.maximumf %43, %44 : vector<128x64xf32>
    %46 = arith.truncf %45 : vector<128x64xf32> to vector<128x64xbf16>
    %cst_35 = arith.constant dense<0.000000e+00> : vector<128x64xf32>
    %47 = tpu.matmul %0, %46, %cst_35 {dimension_numbers = #tpu.dot_dimension_numbers<[1], [0], [0], [1], [0, 0, 1, 1], [], []>} : vector<128x128xbf16>, vector<128x64xbf16>, vector<128x64xf32> -> vector<128x64xf32>
    %c4 = arith.constant 4 : index
    %c0_36 = arith.constant 0 : index
    %c0_37 = arith.constant 0 : index
    %48 = vector.load %arg2[%c4, %c0_36, %c0_37] : memref<8x64x64xf32, #tpu.memory_space<vmem>>, vector<1x64x64xf32>
    %49 = vector.shape_cast %48 : vector<1x64x64xf32> to vector<64x64xf32>
    %cst_38 = arith.constant dense<0.000000e+00> : vector<128x64xf32>
    %50 = tpu.matmul %47, %49, %cst_38 {dimension_numbers = #tpu.dot_dimension_numbers<[1], [0], [0], [1], [0, 0, 1, 1], [], []>} : vector<128x64xf32>, vector<64x64xf32>, vector<128x64xf32> -> vector<128x64xf32>
    %c4_39 = arith.constant 4 : index
    %c0_40 = arith.constant 0 : index
    %c0_41 = arith.constant 0 : index
    %51 = vector.load %arg3[%c4_39, %c0_40, %c0_41] : memref<8x1x64xf32, #tpu.memory_space<vmem>>, vector<1x1x64xf32>
    %52 = vector.shape_cast %51 : vector<1x1x64xf32> to vector<1x64xf32>
    %53 = vector.broadcast %52 : vector<1x64xf32> to vector<128x64xf32>
    %54 = arith.addf %50, %53 : vector<128x64xf32>
    %cst_42 = arith.constant 0.000000e+00 : f32
    %55 = vector.broadcast %cst_42 : f32 to vector<128x64xf32>
    %56 = arith.maximumf %54, %55 : vector<128x64xf32>
    %57 = arith.truncf %56 : vector<128x64xf32> to vector<128x64xbf16>
    %cst_43 = arith.constant dense<0.000000e+00> : vector<128x64xf32>
    %58 = tpu.matmul %0, %57, %cst_43 {dimension_numbers = #tpu.dot_dimension_numbers<[1], [0], [0], [1], [0, 0, 1, 1], [], []>} : vector<128x128xbf16>, vector<128x64xbf16>, vector<128x64xf32> -> vector<128x64xf32>
    %c5 = arith.constant 5 : index
    %c0_44 = arith.constant 0 : index
    %c0_45 = arith.constant 0 : index
    %59 = vector.load %arg2[%c5, %c0_44, %c0_45] : memref<8x64x64xf32, #tpu.memory_space<vmem>>, vector<1x64x64xf32>
    %60 = vector.shape_cast %59 : vector<1x64x64xf32> to vector<64x64xf32>
    %cst_46 = arith.constant dense<0.000000e+00> : vector<128x64xf32>
    %61 = tpu.matmul %58, %60, %cst_46 {dimension_numbers = #tpu.dot_dimension_numbers<[1], [0], [0], [1], [0, 0, 1, 1], [], []>} : vector<128x64xf32>, vector<64x64xf32>, vector<128x64xf32> -> vector<128x64xf32>
    %c5_47 = arith.constant 5 : index
    %c0_48 = arith.constant 0 : index
    %c0_49 = arith.constant 0 : index
    %62 = vector.load %arg3[%c5_47, %c0_48, %c0_49] : memref<8x1x64xf32, #tpu.memory_space<vmem>>, vector<1x1x64xf32>
    %63 = vector.shape_cast %62 : vector<1x1x64xf32> to vector<1x64xf32>
    %64 = vector.broadcast %63 : vector<1x64xf32> to vector<128x64xf32>
    %65 = arith.addf %61, %64 : vector<128x64xf32>
    %cst_50 = arith.constant 0.000000e+00 : f32
    %66 = vector.broadcast %cst_50 : f32 to vector<128x64xf32>
    %67 = arith.maximumf %65, %66 : vector<128x64xf32>
    %68 = arith.truncf %67 : vector<128x64xf32> to vector<128x64xbf16>
    %cst_51 = arith.constant dense<0.000000e+00> : vector<128x64xf32>
    %69 = tpu.matmul %0, %68, %cst_51 {dimension_numbers = #tpu.dot_dimension_numbers<[1], [0], [0], [1], [0, 0, 1, 1], [], []>} : vector<128x128xbf16>, vector<128x64xbf16>, vector<128x64xf32> -> vector<128x64xf32>
    %c6 = arith.constant 6 : index
    %c0_52 = arith.constant 0 : index
    %c0_53 = arith.constant 0 : index
    %70 = vector.load %arg2[%c6, %c0_52, %c0_53] : memref<8x64x64xf32, #tpu.memory_space<vmem>>, vector<1x64x64xf32>
    %71 = vector.shape_cast %70 : vector<1x64x64xf32> to vector<64x64xf32>
    %cst_54 = arith.constant dense<0.000000e+00> : vector<128x64xf32>
    %72 = tpu.matmul %69, %71, %cst_54 {dimension_numbers = #tpu.dot_dimension_numbers<[1], [0], [0], [1], [0, 0, 1, 1], [], []>} : vector<128x64xf32>, vector<64x64xf32>, vector<128x64xf32> -> vector<128x64xf32>
    %c6_55 = arith.constant 6 : index
    %c0_56 = arith.constant 0 : index
    %c0_57 = arith.constant 0 : index
    %73 = vector.load %arg3[%c6_55, %c0_56, %c0_57] : memref<8x1x64xf32, #tpu.memory_space<vmem>>, vector<1x1x64xf32>
    %74 = vector.shape_cast %73 : vector<1x1x64xf32> to vector<1x64xf32>
    %75 = vector.broadcast %74 : vector<1x64xf32> to vector<128x64xf32>
    %76 = arith.addf %72, %75 : vector<128x64xf32>
    %cst_58 = arith.constant 0.000000e+00 : f32
    %77 = vector.broadcast %cst_58 : f32 to vector<128x64xf32>
    %78 = arith.maximumf %76, %77 : vector<128x64xf32>
    %79 = arith.truncf %78 : vector<128x64xf32> to vector<128x64xbf16>
    %cst_59 = arith.constant dense<0.000000e+00> : vector<128x64xf32>
    %80 = tpu.matmul %0, %79, %cst_59 {dimension_numbers = #tpu.dot_dimension_numbers<[1], [0], [0], [1], [0, 0, 1, 1], [], []>} : vector<128x128xbf16>, vector<128x64xbf16>, vector<128x64xf32> -> vector<128x64xf32>
    %c7 = arith.constant 7 : index
    %c0_60 = arith.constant 0 : index
    %c0_61 = arith.constant 0 : index
    %81 = vector.load %arg2[%c7, %c0_60, %c0_61] : memref<8x64x64xf32, #tpu.memory_space<vmem>>, vector<1x64x64xf32>
    %82 = vector.shape_cast %81 : vector<1x64x64xf32> to vector<64x64xf32>
    %cst_62 = arith.constant dense<0.000000e+00> : vector<128x64xf32>
    %83 = tpu.matmul %80, %82, %cst_62 {dimension_numbers = #tpu.dot_dimension_numbers<[1], [0], [0], [1], [0, 0, 1, 1], [], []>} : vector<128x64xf32>, vector<64x64xf32>, vector<128x64xf32> -> vector<128x64xf32>
    %c7_63 = arith.constant 7 : index
    %c0_64 = arith.constant 0 : index
    %c0_65 = arith.constant 0 : index
    %84 = vector.load %arg3[%c7_63, %c0_64, %c0_65] : memref<8x1x64xf32, #tpu.memory_space<vmem>>, vector<1x1x64xf32>
    %85 = vector.shape_cast %84 : vector<1x1x64xf32> to vector<1x64xf32>
    %86 = vector.broadcast %85 : vector<1x64xf32> to vector<128x64xf32>
    %87 = arith.addf %83, %86 : vector<128x64xf32>
    %88 = arith.negf %87 : vector<128x64xf32>
    %89 = math.exp %88 : vector<128x64xf32>
    %cst_66 = arith.constant 1.000000e+00 : f32
    %90 = vector.broadcast %cst_66 : f32 to vector<128x64xf32>
    %91 = arith.addf %90, %89 : vector<128x64xf32>
    %92 = arith.divf %90, %91 : vector<128x64xf32>
    %c0_67 = arith.constant 0 : index
    %c0_68 = arith.constant 0 : index
    %93 = vector.load %arg4[%c0_67, %c0_68] : memref<128x64xf32, #tpu.memory_space<vmem>>, vector<128x64xf32>
    tpu.vector_store %arg4[%c0_67, %c0_68], %92 {strides = array<i32>} : memref<128x64xf32, #tpu.memory_space<vmem>>, vector<128x64xf32>,
    return
  }
}

</mosaic_0001>

<bundles_post_ra>
// kernel: tpu_custom_call.1
= control target key start
LH: loop header
LB: loop body
LE: loop exit
PB: predicated region body
PF: predicated region fallthrough
CT: control target
= control target key end

     0   :  { %9 = vsyncpa [#allocation3], 0  ;;  %s4166_s15 = smov [#allocation2]   ;;  %s4776_s0 = inlined_call_operand.vmem [shape: bf16[128,128], index: 0, kind: input, shape index: {}]   ;;  %s4777_s1 = inlined_call_operand.vmem [shape: f32[128,64], index: 1, kind: input, shape index: {}]   ;;  %s4778_s2 = inlined_call_operand.hbm [shape: f32[8,64,64], index: 2, kind: input, shape index: {}]   ;;  %s4779_s3 = inlined_call_operand.vmem [shape: f32[8,1,64], index: 3, kind: input, shape index: {}]   ;;  %s4780_s4 = inlined_call_operand.vmem [shape: f32[128,64], index: 4, kind: output, shape index: {}]  }
   0x1   :  { %s19_s16 = sshll.u32 %s4166_s15, 4  ;;  %s4142_s19 = scalar_lea.hbm %s4778_s2, 8192  ;;  %s20_s16 = int_to_ptr.vmem [resolvable:$true] %s19_s16 }
   0x2   :  { %p4143_p0 = scmp.ne.s32.totalorder %s4778_s2, %s4142_s19  ;;  %p4146_p1 = scmp.lt.u32.totalorder %s4142_s19, %s4778_s2 }
   0x4   :  { %p4148_p2 = pnand %p4146_p1, %p4143_p0 }
   0x6   :  { %4151 = shalt.err (!%p4148_p2)
}
   0x7   :  { %s4152_s24 = scalar_lea.vmem %s20_s16, 8192  ;;  %p4157_p4 = scmp.lt.s32.totalorder %s20_s16, %s20_s16 }
   0x8   :  { %p4153_p3 = scmp.ne.s32.totalorder %s20_s16, %s4152_s24  ;;  %p4158_p5 = scmp.lt.s32.totalorder %s4152_s24, %s4152_s24 }
   0xa   :  { %p4159_p6 = por %p4158_p5, %p4157_p4 }
   0xc   :  { %p4160_p7 = pnand %p4159_p6, %p4153_p3 }
   0xe   :  { %4163 = shalt.err (!%p4160_p7)
}
   0xf   :  { %s4167_s25 = smov 128   ;;  %s4168_s26 = smov 8  }
  0x10   :  { %25 = dma.hbm_to_vmem [thread:$0]  %s4778_s2, 8192, %s20_s16, [#allocation3], %s4167_s25, %s4167_s25, %s4168_s26  }
  0x11   :  { %4164 = dma.done.wait [#allocation3], 8192  }
  0x12   :  { %4165 = vsyncadd [#allocation3], 4294959104  ;;  %v48_v0 = vld [vmem:[%s4777_s1] sm:$0xff]  ;;  %v49_v1 = vld [vmem:[%s4777_s1 + $0x8] sm:$0xff]  ;;  %vm232_vm0 = vcmask 523264  }
  0x13   :  { %v50_v2 = vld [vmem:[%s4777_s1 + $0x10] sm:$0xff]  ;;  %v64_v3 = vpack.c.bf16 %v49_v1, %v48_v0  ;;  %v51_v4 = vld [vmem:[%s4777_s1 + $0x18] sm:$0xff]  ;;  %v52_v6 = vld [vmem:[%s4777_s1 + $0x20] sm:$0xff] }
  0x14   :  { %v65_v5 = vpack.c.bf16 %v51_v4, %v50_v2  ;;  %v53_v7 = vld [vmem:[%s4777_s1 + $0x28] sm:$0xff]  ;;  %v54_v8 = vld [vmem:[%s4777_s1 + $0x30] sm:$0xff]  ;;  %v55_v10 = vld [vmem:[%s4777_s1 + $0x38] sm:$0xff] }
  0x15   :  { %3347 = vmatprep.subr.bf16.mxu0 %v64_v3  ;;  %v66_v9 = vpack.c.bf16 %v53_v7, %v52_v6  ;;  %v4233_v11 = vld [vmem:[%s4776_s0] sm:$0xff]   ;;  %v67_v12 = vpack.c.bf16 %v55_v10, %v54_v8  ;;  %v57_v14 = vld [vmem:[%s4777_s1 + $0x48] sm:$0xff]  ;;  %v58_v16 = vld [vmem:[%s4777_s1 + $0x50] sm:$0xff] }
  0x16   :  { %3348 = vmatpush3.bf16.msra.mxu0 %v64_v3  ;;  %3363 = vmatprep.mubr.bf16.mxu0 %v4233_v11  ;;  %v56_v13 = vld [vmem:[%s4777_s1 + $0x40] sm:$0xff]  ;;  %v218_v18 = vld [vmem:[#allocation2 + $0x8] sm:$0xff]  ;;  %v59_v19 = vld [vmem:[%s4777_s1 + $0x58] sm:$0xff] }
  0x17   :  { %3349 = vmatprep.subr.bf16.mxu0 %v65_v5  ;;  %v68_v15 = vpack.c.bf16 %v57_v14, %v56_v13  ;;  %v217_v17 = vld [vmem:[#allocation2] sm:$0xff]  ;;  %v219_v21 = vld [vmem:[#allocation2 + $0x10] sm:$0xff]  ;;  %v220_v22 = vld [vmem:[#allocation2 + $0x18] sm:$0xff]  ;;  %v69_v26 = vpack.c.bf16 %v59_v19, %v58_v16 }
  0x18   :  { %v3923_v20 = vpack.c.bf16 %v218_v18, %v217_v17  ;;  %v3927_v23 = vpack.c.bf16 %v220_v22, %v219_v21  ;;  %v221_v24 = vld [vmem:[#allocation2 + $0x20] sm:$0xff]  ;;  %v222_v25 = vld [vmem:[#allocation2 + $0x28] sm:$0xff]  ;;  %v62_v31 = vld [vmem:[%s4777_s1 + $0x70] sm:$0xff] }
  0x19   :  { %v60_v27 = vld [vmem:[%s4777_s1 + $0x60] sm:$0xff]  ;;  %v61_v28 = vld [vmem:[%s4777_s1 + $0x68] sm:$0xff]  ;;  %v3931_v29 = vpack.c.bf16 %v222_v25, %v221_v24  ;;  %v63_v32 = vld [vmem:[%s4777_s1 + $0x78] sm:$0xff] }
  0x1a   :  { %3350 = vmatpush3.bf16.msra.mxu0 %v65_v5  ;;  %3924 = vmatprep.subr.bf16.mxu1 %v3923_v20  ;;  %v70_v30 = vpack.c.bf16 %v61_v28, %v60_v27  ;;  %v71_v33 = vpack.c.bf16 %v63_v32, %v62_v31  ;;  %v4263_v34 = vld [vmem:[%s4776_s0 + $0x8] sm:$0xff]   ;;  %v4268_v35 = vld [vmem:[%s4776_s0 + $0x10] sm:$0xff]   ;;  %v4275_v36 = vld [vmem:[%s4776_s0 + $0x18] sm:$0xff]  }
  0x1b   :  { %3351 = vmatprep.subr.bf16.mxu0 %v66_v9  ;;  %3926 = vmatpush3.bf16.msra.mxu1 %v3923_v20  ;;  %v4280_v37 = vld [vmem:[%s4776_s0 + $0x20] sm:$0xff]   ;;  %v4287_v38 = vld [vmem:[%s4776_s0 + $0x28] sm:$0xff]   ;;  %v4292_v39 = vld [vmem:[%s4776_s0 + $0x30] sm:$0xff]  }
  0x1c   :  { %3928 = vmatprep.subr.bf16.mxu1 %v3927_v23  ;;  %v4299_v40 = vld [vmem:[%s4776_s0 + $0x38] sm:$0xff]   ;;  %v223_v41 = vld [vmem:[#allocation2 + $0x30] sm:$0xff]  ;;  %v548_v60 = vld [vmem:[#allocation2 + $0x40] sm:$0xff] }
  0x1d   :  { %v224_v42 = vld [vmem:[#allocation2 + $0x38] sm:$0xff]  ;;  %v549_v61 = vld [vmem:[#allocation2 + $0x48] sm:$0xff]  ;;  %v550_v62 = vld [vmem:[#allocation2 + $0x50] sm:$0xff] }
  0x1e   :  { %3352 = vmatpush3.bf16.msra.mxu0 %v66_v9  ;;  %v3935_v43 = vpack.c.bf16 %v224_v42, %v223_v41  ;;  %v3939_v63 = vpack.c.bf16 %v549_v61, %v548_v60  ;;  %v551_v0 = vld [vmem:[#allocation2 + $0x58] sm:$0xff]  ;;  %v552_v2 = vld [vmem:[#allocation2 + $0x60] sm:$0xff]  ;;  %v553_v3 = vld [vmem:[#allocation2 + $0x68] sm:$0xff] }
  0x1f   :  { %3353 = vmatprep.subr.bf16.mxu0 %v67_v12  ;;  %3930 = vmatpush3.bf16.msra.mxu1 %v3927_v23  ;;  %v3943_v1 = vpack.c.bf16 %v551_v0, %v550_v62  ;;  %v3947_v4 = vpack.c.bf16 %v553_v3, %v552_v2  ;;  %v554_v5 = vld [vmem:[#allocation2 + $0x70] sm:$0xff]  ;;  %v555_v6 = vld [vmem:[#allocation2 + $0x78] sm:$0xff]  ;;  %v4322_v8 = vld [vmem:[%s4779_s3] ss:$0 sm:$0xff] }
  0x20   :  { %3932 = vmatprep.subr.bf16.mxu1 %v3931_v29  ;;  %v3951_v7 = vpack.c.bf16 %v555_v6, %v554_v5 }
  0x22   :  { %3354 = vmatpush3.bf16.msra.mxu0 %v67_v12 }
  0x23   :  { %3355 = vmatprep.subr.bf16.mxu0 %v68_v15  ;;  %3934 = vmatpush3.bf16.msra.mxu1 %v3931_v29 }
  0x24   :  { %3936 = vmatprep.subr.bf16.mxu1 %v3935_v43 }
  0x26   :  { %3356 = vmatpush3.bf16.msra.mxu0 %v68_v15 }
  0x27   :  { %3357 = vmatprep.subr.bf16.mxu0 %v69_v26  ;;  %3938 = vmatpush3.bf16.msra.mxu1 %v3935_v43 }
  0x2a   :  { %3358 = vmatpush3.bf16.msra.mxu0 %v69_v26 }
  0x2b   :  { %3359 = vmatprep.subr.bf16.mxu0 %v70_v30 }
  0x2e   :  { %3360 = vmatpush3.bf16.msra.mxu0 %v70_v30 }
  0x2f   :  { %3361 = vmatprep.subr.bf16.mxu0 %v71_v33 }
  0x32   :  { %3362 = vmatpush3.bf16.msra.mxu0 %v71_v33 }
  0x33   :  { %3940 = vmatprep.subr.bf16.mxu0 %v3939_v63 }
  0x35   :  { %3364 = vmatmul.mubr.bf16.vlgmr.msra.gmra.mrb[0].mxu0 %v4263_v34 }
  0x36   :  { %3367 = vmatprep.mubr.bf16.mxu0 %v4268_v35  ;;  %3942 = vmatpush3.bf16.msra.mxu0 %v3939_v63 }
  0x37   :  { %3944 = vmatprep.subr.bf16.mxu0 %v3943_v1 }
  0x3a   :  { %3946 = vmatpush3.bf16.msra.mxu0 %v3943_v1 }
  0x3b   :  { %3948 = vmatprep.subr.bf16.mxu0 %v3947_v4 }
  0x3d   :  { %3368 = vmatmul.mubr.bf16.gmra.mrb[4].mxu0 %v4275_v36 }
  0x3e   :  { %3371 = vmatprep.mubr.bf16.mxu0 %v4280_v37  ;;  %3950 = vmatpush3.bf16.msra.mxu0 %v3947_v4 }
  0x3f   :  { %3952 = vmatprep.subr.bf16.mxu0 %v3951_v7 }
  0x42   :  { %3954 = vmatpush3.bf16.msra.mxu0 %v3951_v7 }
  0x45   :  { %3372 = vmatmul.mubr.bf16.gmra.mrb[8].mxu0 %v4287_v38 }
  0x46   :  { %3375 = vmatprep.mubr.bf16.mxu0 %v4292_v39 }
  0x4d   :  { %3376 = vmatmul.mubr.bf16.gmra.mrb[12].mxu0 %v4299_v40 }
 0x108   :  { %v3365_v44 = vpop.f32.mrb[0].mxu0 }
 0x109   :  { %v154_v45 = vpop.f32.mrb[1].mxu0 }
 0x10a   :  { %v3366_v46 = vpop.f32.mrb[2].mxu0  ;;  %3395 = vmatprep.mubr.msk.f32.mxu1 %vm232_vm0, %v154_v45 }
 0x10b   :  { %v157_v47 = vpop.f32.mrb[3].mxu0 }
 0x10c   :  { %3396 = vmatmul.mubr.msk.f32.vlgmr.msra.gmra.mrb[0].mxu1 %vm232_vm0, %v157_v47 }
 0x10d   :  { %3398 = vmatprep.mubr.msk.f32.mxu1 %vm232_vm0, %v3365_v44 }
 0x110   :  { %v3369_v48 = vpop.f32.mrb[4].mxu0  ;;  %3399 = vmatmul.mubr.msk.f32.gmra.mrb[2].mxu1 %vm232_vm0, %v3366_v46 }
 0x111   :  { %v170_v49 = vpop.f32.mrb[5].mxu0 }
 0x112   :  { %v3370_v50 = vpop.f32.mrb[6].mxu0  ;;  %3401 = vmatprep.mubr.msk.f32.mxu1 %vm232_vm0, %v170_v49 }
 0x113   :  { %v173_v51 = vpop.f32.mrb[7].mxu0 }
 0x114   :  { %3402 = vmatmul.mubr.msk.f32.gmra.mrb[4].mxu1 %vm232_vm0, %v173_v51 }
 0x115   :  { %3404 = vmatprep.mubr.msk.f32.mxu1 %vm232_vm0, %v3369_v48 }
 0x118   :  { %v3373_v52 = vpop.f32.mrb[8].mxu0  ;;  %3405 = vmatmul.mubr.msk.f32.gmra.mrb[6].mxu1 %vm232_vm0, %v3370_v50 }
 0x119   :  { %v186_v53 = vpop.f32.mrb[9].mxu0 }
 0x11a   :  { %v3374_v54 = vpop.f32.mrb[10].mxu0  ;;  %3407 = vmatprep.mubr.msk.f32.mxu1 %vm232_vm0, %v186_v53 }
 0x11b   :  { %v189_v55 = vpop.f32.mrb[11].mxu0 }
 0x11c   :  { %3408 = vmatmul.mubr.msk.f32.gmra.mrb[8].mxu1 %vm232_vm0, %v189_v55 }
 0x11d   :  { %3410 = vmatprep.mubr.msk.f32.mxu1 %vm232_vm0, %v3373_v52 }
 0x120   :  { %v3377_v56 = vpop.f32.mrb[12].mxu0  ;;  %3411 = vmatmul.mubr.msk.f32.gmra.mrb[10].mxu1 %vm232_vm0, %v3374_v54 }
 0x121   :  { %v202_v57 = vpop.f32.mrb[13].mxu0 }
 0x122   :  { %v3378_v58 = vpop.f32.mrb[14].mxu0  ;;  %3413 = vmatprep.mubr.msk.f32.mxu1 %vm232_vm0, %v202_v57 }
 0x123   :  { %v205_v59 = vpop.f32.mrb[15].mxu0 }
 0x124   :  { %3414 = vmatmul.mubr.msk.f32.gmra.mrb[12].mxu1 %vm232_vm0, %v205_v59 }
 0x125   :  { %3416 = vmatprep.mubr.msk.f32.mxu1 %vm232_vm0, %v3377_v56 }
 0x128   :  { %3417 = vmatmul.mubr.msk.f32.gmra.mrb[14].mxu1 %vm232_vm0, %v3378_v58 }
 0x129   :  { %3435 = vmatprep.mubr.bf16.mxu1 %v4233_v11 }
 0x1df   :  { %v3397_v9 = vpop.f32.mrb[0].mxu1 }
 0x1e0   :  { %v353_v10 = vadd.f32 %v3397_v9, %v4322_v8  ;;  %v347_v12 = vpop.f32.mrb[1].mxu1 }
 0x1e1   :  { %v348_v13 = vadd.f32 %v4322_v8, %v347_v12 }
 0x1e2   :  { %v427_v14 = vmax.f32 %v353_v10, 0.0 }
 0x1e3   :  { %v426_v15 = vmax.f32 %v348_v13, 0.0  ;;  %v3400_v16 = vpop.f32.mrb[2].mxu1 }
 0x1e4   :  { %v363_v17 = vadd.f32 %v3400_v16, %v4322_v8  ;;  %v357_v18 = vpop.f32.mrb[3].mxu1 }
 0x1e5   :  { %v442_v19 = vpack.c.bf16 %v427_v14, %v426_v15  ;;  %v358_v20 = vadd.f32 %v4322_v8, %v357_v18 }
 0x1e6   :  { %v429_v21 = vmax.f32 %v363_v17, 0.0 }
 0x1e7   :  { %v428_v22 = vmax.f32 %v358_v20, 0.0  ;;  %v3403_v23 = vpop.f32.mrb[4].mxu1  ;;  %3419 = vmatprep.subr.bf16.mxu1 %v442_v19 }
 0x1e8   :  { %v373_v24 = vadd.f32 %v3403_v23, %v4322_v8  ;;  %v367_v25 = vpop.f32.mrb[5].mxu1  ;;  %3420 = vmatpush3.bf16.msra.mxu1 %v442_v19 }
 0x1e9   :  { %v443_v26 = vpack.c.bf16 %v429_v21, %v428_v22  ;;  %v368_v27 = vadd.f32 %v4322_v8, %v367_v25 }
 0x1ea   :  { %v431_v28 = vmax.f32 %v373_v24, 0.0 }
 0x1eb   :  { %v430_v29 = vmax.f32 %v368_v27, 0.0  ;;  %v3406_v30 = vpop.f32.mrb[6].mxu1  ;;  %3421 = vmatprep.subr.bf16.mxu1 %v443_v26  ;;  %v880_v27 = vld [vmem:[#allocation2 + $0x88] sm:$0xff] }
 0x1ec   :  { %v383_v31 = vadd.f32 %v3406_v30, %v4322_v8  ;;  %v377_v32 = vpop.f32.mrb[7].mxu1  ;;  %3422 = vmatpush3.bf16.msra.mxu1 %v443_v26  ;;  %v879_v26 = vld [vmem:[#allocation2 + $0x80] sm:$0xff]  ;;  %v882_v30 = vld [vmem:[#allocation2 + $0x98] sm:$0xff] }
 0x1ed   :  { %v444_v33 = vpack.c.bf16 %v431_v28, %v430_v29  ;;  %v378_v41 = vadd.f32 %v4322_v8, %v377_v32  ;;  %v881_v28 = vld [vmem:[#allocation2 + $0x90] sm:$0xff]  ;;  %v3955_v29 = vpack.c.bf16 %v880_v27, %v879_v26  ;;  %v883_v32 = vld [vmem:[#allocation2 + $0xa0] sm:$0xff] }
 0x1ee   :  { %v433_v42 = vmax.f32 %v383_v31, 0.0  ;;  %v3959_v31 = vpack.c.bf16 %v882_v30, %v881_v28 }
 0x1ef   :  { %v432_v43 = vmax.f32 %v378_v41, 0.0  ;;  %v3409_v44 = vpop.f32.mrb[8].mxu1  ;;  %3423 = vmatprep.subr.bf16.mxu1 %v444_v33  ;;  %3956 = vmatprep.subr.bf16.mxu0 %v3955_v29 }
 0x1f0   :  { %v393_v45 = vadd.f32 %v3409_v44, %v4322_v8  ;;  %v387_v46 = vpop.f32.mrb[9].mxu1  ;;  %3424 = vmatpush3.bf16.msra.mxu1 %v444_v33  ;;  %v884_v33 = vld [vmem:[#allocation2 + $0xa8] sm:$0xff] }
 0x1f1   :  { %v445_v47 = vpack.c.bf16 %v433_v42, %v432_v43  ;;  %v388_v48 = vadd.f32 %v4322_v8, %v387_v46  ;;  %v3963_v41 = vpack.c.bf16 %v884_v33, %v883_v32  ;;  %v885_v42 = vld [vmem:[#allocation2 + $0xb0] sm:$0xff]  ;;  %v886_v43 = vld [vmem:[#allocation2 + $0xb8] sm:$0xff] }
 0x1f2   :  { %v435_v49 = vmax.f32 %v393_v45, 0.0  ;;  %v3967_v44 = vpack.c.bf16 %v886_v43, %v885_v42  ;;  %v4367_v45 = vld [vmem:[%s4779_s3 + $0x1] ss:$0 sm:$0xff] }
 0x1f3   :  { %v434_v50 = vmax.f32 %v388_v48, 0.0  ;;  %v3412_v51 = vpop.f32.mrb[10].mxu1  ;;  %3425 = vmatprep.subr.bf16.mxu1 %v445_v47 }
 0x1f4   :  { %v403_v52 = vadd.f32 %v3412_v51, %v4322_v8  ;;  %v397_v53 = vpop.f32.mrb[11].mxu1  ;;  %3426 = vmatpush3.bf16.msra.mxu1 %v445_v47 }
 0x1f5   :  { %v446_v54 = vpack.c.bf16 %v435_v49, %v434_v50  ;;  %v398_v55 = vadd.f32 %v4322_v8, %v397_v53 }
 0x1f6   :  { %v437_v56 = vmax.f32 %v403_v52, 0.0 }
 0x1f7   :  { %v436_v57 = vmax.f32 %v398_v55, 0.0  ;;  %v3415_v58 = vpop.f32.mrb[12].mxu1  ;;  %3427 = vmatprep.subr.bf16.mxu1 %v446_v54 }
 0x1f8   :  { %v413_v59 = vadd.f32 %v3415_v58, %v4322_v8  ;;  %v407_v60 = vpop.f32.mrb[13].mxu1  ;;  %3428 = vmatpush3.bf16.msra.mxu1 %v446_v54 }
 0x1f9   :  { %v447_v61 = vpack.c.bf16 %v437_v56, %v436_v57  ;;  %v408_v62 = vadd.f32 %v4322_v8, %v407_v60 }
 0x1fa   :  { %v439_v63 = vmax.f32 %v413_v59, 0.0 }
 0x1fb   :  { %v438_v0 = vmax.f32 %v408_v62, 0.0  ;;  %v3418_v1 = vpop.f32.mrb[14].mxu1  ;;  %3429 = vmatprep.subr.bf16.mxu1 %v447_v61 }
 0x1fc   :  { %v423_v2 = vadd.f32 %v3418_v1, %v4322_v8  ;;  %v417_v3 = vpop.f32.mrb[15].mxu1  ;;  %3430 = vmatpush3.bf16.msra.mxu1 %v447_v61 }
 0x1fd   :  { %v448_v4 = vpack.c.bf16 %v439_v63, %v438_v0  ;;  %v418_v5 = vadd.f32 %v4322_v8, %v417_v3 }
 0x1fe   :  { %v441_v6 = vmax.f32 %v423_v2, 0.0 }
 0x1ff   :  { %v440_v7 = vmax.f32 %v418_v5, 0.0  ;;  %3431 = vmatprep.subr.bf16.mxu1 %v448_v4 }
 0x200   :  { %3432 = vmatpush3.bf16.msra.mxu1 %v448_v4 }
 0x201   :  { %v449_v9 = vpack.c.bf16 %v441_v6, %v440_v7 }
 0x203   :  { %3433 = vmatprep.subr.bf16.mxu1 %v449_v9 }
 0x204   :  { %3434 = vmatpush3.bf16.msra.mxu1 %v449_v9 }
 0x207   :  { %3436 = vmatmul.mubr.bf16.vlgmr.msra.gmra.mrb[16].mxu1 %v4263_v34 }
 0x208   :  { %3439 = vmatprep.mubr.bf16.mxu1 %v4268_v35 }
 0x20f   :  { %3440 = vmatmul.mubr.bf16.gmra.mrb[20].mxu1 %v4275_v36 }
 0x210   :  { %3443 = vmatprep.mubr.bf16.mxu1 %v4280_v37 }
 0x217   :  { %3444 = vmatmul.mubr.bf16.gmra.mrb[24].mxu1 %v4287_v38 }
 0x218   :  { %3447 = vmatprep.mubr.bf16.mxu1 %v4292_v39 }
 0x21f   :  { %3448 = vmatmul.mubr.bf16.gmra.mrb[28].mxu1 %v4299_v40 }
 0x220   :  { %3507 = vmatprep.mubr.bf16.mxu1 %v4233_v11 }
 0x2da   :  { %v3437_v8 = vpop.f32.mrb[16].mxu1 }
 0x2db   :  { %v484_v10 = vpop.f32.mrb[17].mxu1 }
 0x2dc   :  { %v3438_v12 = vpop.f32.mrb[18].mxu1  ;;  %3467 = vmatprep.mubr.msk.f32.mxu0 %vm232_vm0, %v484_v10 }
 0x2dd   :  { %v487_v13 = vpop.f32.mrb[19].mxu1 }
 0x2de   :  { %3468 = vmatmul.mubr.msk.f32.vlgmr.msra.gmra.mrb[16].mxu0 %vm232_vm0, %v487_v13 }
 0x2df   :  { %3470 = vmatprep.mubr.msk.f32.mxu0 %vm232_vm0, %v3437_v8  ;;  %3958 = vmatpush3.bf16.msra.mxu0 %v3955_v29 }
 0x2e0   :  { %3960 = vmatprep.subr.bf16.mxu0 %v3959_v31 }
 0x2e2   :  { %v3441_v14 = vpop.f32.mrb[20].mxu1  ;;  %3471 = vmatmul.mubr.msk.f32.gmra.mrb[18].mxu0 %vm232_vm0, %v3438_v12 }
 0x2e3   :  { %v500_v15 = vpop.f32.mrb[21].mxu1  ;;  %3962 = vmatpush3.bf16.msra.mxu0 %v3959_v31 }
 0x2e4   :  { %v3442_v16 = vpop.f32.mrb[22].mxu1  ;;  %3473 = vmatprep.mubr.msk.f32.mxu0 %vm232_vm0, %v500_v15  ;;  %3964 = vmatprep.subr.bf16.mxu0 %v3963_v41 }
 0x2e5   :  { %v503_v17 = vpop.f32.mrb[23].mxu1 }
 0x2e6   :  { %3474 = vmatmul.mubr.msk.f32.gmra.mrb[20].mxu0 %vm232_vm0, %v503_v17 }
 0x2e7   :  { %3476 = vmatprep.mubr.msk.f32.mxu0 %vm232_vm0, %v3441_v14  ;;  %3966 = vmatpush3.bf16.msra.mxu0 %v3963_v41 }
 0x2e8   :  { %3968 = vmatprep.subr.bf16.mxu0 %v3967_v44 }
 0x2ea   :  { %v3445_v18 = vpop.f32.mrb[24].mxu1  ;;  %3477 = vmatmul.mubr.msk.f32.gmra.mrb[22].mxu0 %vm232_vm0, %v3442_v16 }
 0x2eb   :  { %v516_v19 = vpop.f32.mrb[25].mxu1  ;;  %3970 = vmatpush3.bf16.msra.mxu0 %v3967_v44 }
 0x2ec   :  { %v3446_v20 = vpop.f32.mrb[26].mxu1  ;;  %3479 = vmatprep.mubr.msk.f32.mxu0 %vm232_vm0, %v516_v19 }
 0x2ed   :  { %v519_v21 = vpop.f32.mrb[27].mxu1 }
 0x2ee   :  { %3480 = vmatmul.mubr.msk.f32.gmra.mrb[24].mxu0 %vm232_vm0, %v519_v21 }
 0x2ef   :  { %3482 = vmatprep.mubr.msk.f32.mxu0 %vm232_vm0, %v3445_v18 }
 0x2f2   :  { %v3449_v22 = vpop.f32.mrb[28].mxu1  ;;  %3483 = vmatmul.mubr.msk.f32.gmra.mrb[26].mxu0 %vm232_vm0, %v3446_v20 }
 0x2f3   :  { %v532_v23 = vpop.f32.mrb[29].mxu1 }
 0x2f4   :  { %v3450_v24 = vpop.f32.mrb[30].mxu1  ;;  %3485 = vmatprep.mubr.msk.f32.mxu0 %vm232_vm0, %v532_v23 }
 0x2f5   :  { %v535_v25 = vpop.f32.mrb[31].mxu1 }
 0x2f6   :  { %3486 = vmatmul.mubr.msk.f32.gmra.mrb[28].mxu0 %vm232_vm0, %v535_v25 }
 0x2f7   :  { %3488 = vmatprep.mubr.msk.f32.mxu0 %vm232_vm0, %v3449_v22 }
 0x2fa   :  { %3489 = vmatmul.mubr.msk.f32.gmra.mrb[30].mxu0 %vm232_vm0, %v3450_v24 }
 0x3b1   :  { %v3469_v46 = vpop.f32.mrb[16].mxu0 }
 0x3b2   :  { %v684_v47 = vadd.f32 %v3469_v46, %v4367_v45  ;;  %v678_v48 = vpop.f32.mrb[17].mxu0 }
 0x3b3   :  { %v679_v49 = vadd.f32 %v4367_v45, %v678_v48 }
 0x3b4   :  { %v758_v50 = vmax.f32 %v684_v47, 0.0 }
 0x3b5   :  { %v757_v51 = vmax.f32 %v679_v49, 0.0  ;;  %v3472_v52 = vpop.f32.mrb[18].mxu0 }
 0x3b6   :  { %v694_v53 = vadd.f32 %v3472_v52, %v4367_v45  ;;  %v688_v54 = vpop.f32.mrb[19].mxu0 }
 0x3b7   :  { %v773_v55 = vpack.c.bf16 %v758_v50, %v757_v51  ;;  %v689_v56 = vadd.f32 %v4367_v45, %v688_v54 }
 0x3b8   :  { %v760_v57 = vmax.f32 %v694_v53, 0.0 }
 0x3b9   :  { %v759_v58 = vmax.f32 %v689_v56, 0.0  ;;  %v3475_v59 = vpop.f32.mrb[20].mxu0  ;;  %3491 = vmatprep.subr.bf16.mxu1 %v773_v55 }
 0x3ba   :  { %v704_v60 = vadd.f32 %v3475_v59, %v4367_v45  ;;  %v698_v61 = vpop.f32.mrb[21].mxu0  ;;  %3492 = vmatpush3.bf16.msra.mxu1 %v773_v55 }
 0x3bb   :  { %v774_v62 = vpack.c.bf16 %v760_v57, %v759_v58  ;;  %v699_v63 = vadd.f32 %v4367_v45, %v698_v61 }
 0x3bc   :  { %v762_v0 = vmax.f32 %v704_v60, 0.0 }
 0x3bd   :  { %v761_v1 = vmax.f32 %v699_v63, 0.0  ;;  %v3478_v2 = vpop.f32.mrb[22].mxu0  ;;  %3493 = vmatprep.subr.bf16.mxu1 %v774_v62  ;;  %v1211_v63 = vld [vmem:[#allocation2 + $0xc8] sm:$0xff] }
 0x3be   :  { %v714_v3 = vadd.f32 %v3478_v2, %v4367_v45  ;;  %v708_v4 = vpop.f32.mrb[23].mxu0  ;;  %3494 = vmatpush3.bf16.msra.mxu1 %v774_v62  ;;  %v1210_v62 = vld [vmem:[#allocation2 + $0xc0] sm:$0xff]  ;;  %v1213_v2 = vld [vmem:[#allocation2 + $0xd8] sm:$0xff] }
 0x3bf   :  { %v775_v5 = vpack.c.bf16 %v762_v0, %v761_v1  ;;  %v709_v6 = vadd.f32 %v4367_v45, %v708_v4  ;;  %v1212_v0 = vld [vmem:[#allocation2 + $0xd0] sm:$0xff]  ;;  %v3971_v1 = vpack.c.bf16 %v1211_v63, %v1210_v62  ;;  %v1214_v4 = vld [vmem:[#allocation2 + $0xe0] sm:$0xff] }
 0x3c0   :  { %v764_v7 = vmax.f32 %v714_v3, 0.0  ;;  %v3975_v3 = vpack.c.bf16 %v1213_v2, %v1212_v0 }
 0x3c1   :  { %v763_v9 = vmax.f32 %v709_v6, 0.0  ;;  %v3481_v8 = vpop.f32.mrb[24].mxu0  ;;  %3495 = vmatprep.subr.bf16.mxu1 %v775_v5  ;;  %3972 = vmatprep.subr.bf16.mxu0 %v3971_v1 }
 0x3c2   :  { %v724_v10 = vadd.f32 %v3481_v8, %v4367_v45  ;;  %v718_v12 = vpop.f32.mrb[25].mxu0  ;;  %3496 = vmatpush3.bf16.msra.mxu1 %v775_v5  ;;  %v1215_v5 = vld [vmem:[#allocation2 + $0xe8] sm:$0xff] }
 0x3c3   :  { %v776_v13 = vpack.c.bf16 %v764_v7, %v763_v9  ;;  %v719_v14 = vadd.f32 %v4367_v45, %v718_v12  ;;  %v3979_v6 = vpack.c.bf16 %v1215_v5, %v1214_v4  ;;  %v1216_v7 = vld [vmem:[#allocation2 + $0xf0] sm:$0xff]  ;;  %v1217_v9 = vld [vmem:[#allocation2 + $0xf8] sm:$0xff] }
 0x3c4   :  { %v766_v15 = vmax.f32 %v724_v10, 0.0  ;;  %v3983_v8 = vpack.c.bf16 %v1217_v9, %v1216_v7  ;;  %v4412_v10 = vld [vmem:[%s4779_s3 + $0x2] ss:$0 sm:$0xff] }
 0x3c5   :  { %v765_v16 = vmax.f32 %v719_v14, 0.0  ;;  %v3484_v17 = vpop.f32.mrb[26].mxu0  ;;  %3497 = vmatprep.subr.bf16.mxu1 %v776_v13 }
 0x3c6   :  { %v734_v18 = vadd.f32 %v3484_v17, %v4367_v45  ;;  %v728_v19 = vpop.f32.mrb[27].mxu0  ;;  %3498 = vmatpush3.bf16.msra.mxu1 %v776_v13 }
 0x3c7   :  { %v777_v20 = vpack.c.bf16 %v766_v15, %v765_v16  ;;  %v729_v21 = vadd.f32 %v4367_v45, %v728_v19 }
 0x3c8   :  { %v768_v22 = vmax.f32 %v734_v18, 0.0 }
 0x3c9   :  { %v767_v23 = vmax.f32 %v729_v21, 0.0  ;;  %v3487_v24 = vpop.f32.mrb[28].mxu0  ;;  %3499 = vmatprep.subr.bf16.mxu1 %v777_v20 }
 0x3ca   :  { %v744_v25 = vadd.f32 %v3487_v24, %v4367_v45  ;;  %v738_v26 = vpop.f32.mrb[29].mxu0  ;;  %3500 = vmatpush3.bf16.msra.mxu1 %v777_v20 }
 0x3cb   :  { %v778_v27 = vpack.c.bf16 %v768_v22, %v767_v23  ;;  %v739_v28 = vadd.f32 %v4367_v45, %v738_v26 }
 0x3cc   :  { %v770_v29 = vmax.f32 %v744_v25, 0.0 }
 0x3cd   :  { %v769_v30 = vmax.f32 %v739_v28, 0.0  ;;  %v3490_v31 = vpop.f32.mrb[30].mxu0  ;;  %3501 = vmatprep.subr.bf16.mxu1 %v778_v27 }
 0x3ce   :  { %v754_v32 = vadd.f32 %v3490_v31, %v4367_v45  ;;  %v748_v33 = vpop.f32.mrb[31].mxu0  ;;  %3502 = vmatpush3.bf16.msra.mxu1 %v778_v27 }
 0x3cf   :  { %v779_v41 = vpack.c.bf16 %v770_v29, %v769_v30  ;;  %v749_v42 = vadd.f32 %v4367_v45, %v748_v33 }
 0x3d0   :  { %v772_v43 = vmax.f32 %v754_v32, 0.0 }
 0x3d1   :  { %v771_v44 = vmax.f32 %v749_v42, 0.0  ;;  %3503 = vmatprep.subr.bf16.mxu1 %v779_v41 }
 0x3d2   :  { %3504 = vmatpush3.bf16.msra.mxu1 %v779_v41 }
 0x3d3   :  { %v780_v46 = vpack.c.bf16 %v772_v43, %v771_v44 }
 0x3d5   :  { %3505 = vmatprep.subr.bf16.mxu1 %v780_v46 }
 0x3d6   :  { %3506 = vmatpush3.bf16.msra.mxu1 %v780_v46 }
 0x3d9   :  { %3508 = vmatmul.mubr.bf16.vlgmr.msra.gmra.mrb[32].mxu1 %v4263_v34 }
 0x3da   :  { %3511 = vmatprep.mubr.bf16.mxu1 %v4268_v35 }
 0x3e1   :  { %3512 = vmatmul.mubr.bf16.gmra.mrb[36].mxu1 %v4275_v36 }
 0x3e2   :  { %3515 = vmatprep.mubr.bf16.mxu1 %v4280_v37 }
 0x3e9   :  { %3516 = vmatmul.mubr.bf16.gmra.mrb[40].mxu1 %v4287_v38 }
 0x3ea   :  { %3519 = vmatprep.mubr.bf16.mxu1 %v4292_v39 }
 0x3f1   :  { %3520 = vmatmul.mubr.bf16.gmra.mrb[44].mxu1 %v4299_v40 }
 0x3f2   :  { %3579 = vmatprep.mubr.bf16.mxu1 %v4233_v11 }
 0x4ac   :  { %v3509_v45 = vpop.f32.mrb[32].mxu1 }
 0x4ad   :  { %v815_v47 = vpop.f32.mrb[33].mxu1 }
 0x4ae   :  { %v3510_v48 = vpop.f32.mrb[34].mxu1  ;;  %3539 = vmatprep.mubr.msk.f32.mxu0 %vm232_vm0, %v815_v47 }
 0x4af   :  { %v818_v49 = vpop.f32.mrb[35].mxu1 }
 0x4b0   :  { %3540 = vmatmul.mubr.msk.f32.vlgmr.msra.gmra.mrb[32].mxu0 %vm232_vm0, %v818_v49 }
 0x4b1   :  { %3542 = vmatprep.mubr.msk.f32.mxu0 %vm232_vm0, %v3509_v45  ;;  %3974 = vmatpush3.bf16.msra.mxu0 %v3971_v1 }
 0x4b2   :  { %3976 = vmatprep.subr.bf16.mxu0 %v3975_v3 }
 0x4b4   :  { %v3513_v50 = vpop.f32.mrb[36].mxu1  ;;  %3543 = vmatmul.mubr.msk.f32.gmra.mrb[34].mxu0 %vm232_vm0, %v3510_v48 }
 0x4b5   :  { %v831_v51 = vpop.f32.mrb[37].mxu1  ;;  %3978 = vmatpush3.bf16.msra.mxu0 %v3975_v3 }
 0x4b6   :  { %v3514_v52 = vpop.f32.mrb[38].mxu1  ;;  %3545 = vmatprep.mubr.msk.f32.mxu0 %vm232_vm0, %v831_v51  ;;  %3980 = vmatprep.subr.bf16.mxu0 %v3979_v6 }
 0x4b7   :  { %v834_v53 = vpop.f32.mrb[39].mxu1 }
 0x4b8   :  { %3546 = vmatmul.mubr.msk.f32.gmra.mrb[36].mxu0 %vm232_vm0, %v834_v53 }
 0x4b9   :  { %3548 = vmatprep.mubr.msk.f32.mxu0 %vm232_vm0, %v3513_v50  ;;  %3982 = vmatpush3.bf16.msra.mxu0 %v3979_v6 }
 0x4ba   :  { %3984 = vmatprep.subr.bf16.mxu0 %v3983_v8 }
 0x4bc   :  { %v3517_v54 = vpop.f32.mrb[40].mxu1  ;;  %3549 = vmatmul.mubr.msk.f32.gmra.mrb[38].mxu0 %vm232_vm0, %v3514_v52 }
 0x4bd   :  { %v847_v55 = vpop.f32.mrb[41].mxu1  ;;  %3986 = vmatpush3.bf16.msra.mxu0 %v3983_v8 }
 0x4be   :  { %v3518_v56 = vpop.f32.mrb[42].mxu1  ;;  %3551 = vmatprep.mubr.msk.f32.mxu0 %vm232_vm0, %v847_v55 }
 0x4bf   :  { %v850_v57 = vpop.f32.mrb[43].mxu1 }
 0x4c0   :  { %3552 = vmatmul.mubr.msk.f32.gmra.mrb[40].mxu0 %vm232_vm0, %v850_v57 }
 0x4c1   :  { %3554 = vmatprep.mubr.msk.f32.mxu0 %vm232_vm0, %v3517_v54 }
 0x4c4   :  { %v3521_v58 = vpop.f32.mrb[44].mxu1  ;;  %3555 = vmatmul.mubr.msk.f32.gmra.mrb[42].mxu0 %vm232_vm0, %v3518_v56 }
 0x4c5   :  { %v863_v59 = vpop.f32.mrb[45].mxu1 }
 0x4c6   :  { %v3522_v60 = vpop.f32.mrb[46].mxu1  ;;  %3557 = vmatprep.mubr.msk.f32.mxu0 %vm232_vm0, %v863_v59 }
 0x4c7   :  { %v866_v61 = vpop.f32.mrb[47].mxu1 }
 0x4c8   :  { %3558 = vmatmul.mubr.msk.f32.gmra.mrb[44].mxu0 %vm232_vm0, %v866_v61 }
 0x4c9   :  { %3560 = vmatprep.mubr.msk.f32.mxu0 %vm232_vm0, %v3521_v58 }
 0x4cc   :  { %3561 = vmatmul.mubr.msk.f32.gmra.mrb[46].mxu0 %vm232_vm0, %v3522_v60 }
 0x583   :  { %v3541_v12 = vpop.f32.mrb[32].mxu0 }
 0x584   :  { %v1015_v13 = vadd.f32 %v3541_v12, %v4412_v10  ;;  %v1009_v14 = vpop.f32.mrb[33].mxu0 }
 0x585   :  { %v1010_v15 = vadd.f32 %v4412_v10, %v1009_v14 }
 0x586   :  { %v1089_v16 = vmax.f32 %v1015_v13, 0.0 }
 0x587   :  { %v1088_v17 = vmax.f32 %v1010_v15, 0.0  ;;  %v3544_v18 = vpop.f32.mrb[34].mxu0 }
 0x588   :  { %v1025_v19 = vadd.f32 %v3544_v18, %v4412_v10  ;;  %v1019_v20 = vpop.f32.mrb[35].mxu0 }
 0x589   :  { %v1104_v21 = vpack.c.bf16 %v1089_v16, %v1088_v17  ;;  %v1020_v22 = vadd.f32 %v4412_v10, %v1019_v20  ;;  %v1541_v20 = vld [vmem:[#allocation2 + $0x100] sm:$0xff] }
 0x58a   :  { %v1091_v23 = vmax.f32 %v1025_v19, 0.0 }
 0x58b   :  { %v1090_v24 = vmax.f32 %v1020_v22, 0.0  ;;  %v3547_v25 = vpop.f32.mrb[36].mxu0  ;;  %3563 = vmatprep.subr.bf16.mxu1 %v1104_v21  ;;  %v1543_v22 = vld [vmem:[#allocation2 + $0x110] sm:$0xff] }
 0x58c   :  { %v1035_v26 = vadd.f32 %v3547_v25, %v4412_v10  ;;  %v1029_v27 = vpop.f32.mrb[37].mxu0  ;;  %3564 = vmatpush3.bf16.msra.mxu1 %v1104_v21  ;;  %v1542_v21 = vld [vmem:[#allocation2 + $0x108] sm:$0xff] }
 0x58d   :  { %v1105_v28 = vpack.c.bf16 %v1091_v23, %v1090_v24  ;;  %v1030_v29 = vadd.f32 %v4412_v10, %v1029_v27  ;;  %v3987_v23 = vpack.c.bf16 %v1542_v21, %v1541_v20  ;;  %v1544_v24 = vld [vmem:[#allocation2 + $0x118] sm:$0xff]  ;;  %v1546_v27 = vld [vmem:[#allocation2 + $0x128] sm:$0xff] }
 0x58e   :  { %v1093_v30 = vmax.f32 %v1035_v26, 0.0  ;;  %v3991_v25 = vpack.c.bf16 %v1544_v24, %v1543_v22  ;;  %v1545_v26 = vld [vmem:[#allocation2 + $0x120] sm:$0xff] }
 0x58f   :  { %v1092_v31 = vmax.f32 %v1030_v29, 0.0  ;;  %v3550_v32 = vpop.f32.mrb[38].mxu0  ;;  %3565 = vmatprep.subr.bf16.mxu1 %v1105_v28  ;;  %3988 = vmatprep.subr.bf16.mxu0 %v3987_v23  ;;  %v1547_v29 = vld [vmem:[#allocation2 + $0x130] sm:$0xff] }
 0x590   :  { %v1045_v33 = vadd.f32 %v3550_v32, %v4412_v10  ;;  %v1039_v41 = vpop.f32.mrb[39].mxu0  ;;  %3566 = vmatpush3.bf16.msra.mxu1 %v1105_v28  ;;  %v3995_v28 = vpack.c.bf16 %v1546_v27, %v1545_v26  ;;  %v4457_v32 = vld [vmem:[%s4779_s3 + $0x3] ss:$0 sm:$0xff]  ;;  %v4484_v26 = vld [vmem:[%s4776_s0 + $0x10] sm:$0xff]   ;;  %v4490_v27 = vld [vmem:[%s4776_s0 + $0x18] sm:$0xff]  }
 0x591   :  { %v1106_v42 = vpack.c.bf16 %v1093_v30, %v1092_v31  ;;  %v1040_v43 = vadd.f32 %v4412_v10, %v1039_v41  ;;  %v1548_v30 = vld [vmem:[#allocation2 + $0x138] sm:$0xff] }
 0x592   :  { %v1095_v44 = vmax.f32 %v1045_v33, 0.0  ;;  %v3999_v31 = vpack.c.bf16 %v1548_v30, %v1547_v29  ;;  %v4502_v29 = vld [vmem:[%s4776_s0 + $0x28] sm:$0xff]   ;;  %v4508_v30 = vld [vmem:[%s4776_s0 + $0x30] sm:$0xff]  }
 0x593   :  { %v1094_v46 = vmax.f32 %v1040_v43, 0.0  ;;  %v3553_v45 = vpop.f32.mrb[40].mxu0  ;;  %3567 = vmatprep.subr.bf16.mxu1 %v1106_v42 }
 0x594   :  { %v1055_v47 = vadd.f32 %v3553_v45, %v4412_v10  ;;  %v1049_v48 = vpop.f32.mrb[41].mxu0  ;;  %3568 = vmatpush3.bf16.msra.mxu1 %v1106_v42 }
 0x595   :  { %v1107_v49 = vpack.c.bf16 %v1095_v44, %v1094_v46  ;;  %v1050_v50 = vadd.f32 %v4412_v10, %v1049_v48 }
 0x596   :  { %v1097_v51 = vmax.f32 %v1055_v47, 0.0 }
 0x597   :  { %v1096_v52 = vmax.f32 %v1050_v50, 0.0  ;;  %v3556_v53 = vpop.f32.mrb[42].mxu0  ;;  %3569 = vmatprep.subr.bf16.mxu1 %v1107_v49 }
 0x598   :  { %v1065_v54 = vadd.f32 %v3556_v53, %v4412_v10  ;;  %v1059_v55 = vpop.f32.mrb[43].mxu0  ;;  %3570 = vmatpush3.bf16.msra.mxu1 %v1107_v49 }
 0x599   :  { %v1108_v56 = vpack.c.bf16 %v1097_v51, %v1096_v52  ;;  %v1060_v57 = vadd.f32 %v4412_v10, %v1059_v55 }
 0x59a   :  { %v1099_v58 = vmax.f32 %v1065_v54, 0.0 }
 0x59b   :  { %v1098_v59 = vmax.f32 %v1060_v57, 0.0  ;;  %v3559_v60 = vpop.f32.mrb[44].mxu0  ;;  %3571 = vmatprep.subr.bf16.mxu1 %v1108_v56 }
 0x59c   :  { %v1075_v61 = vadd.f32 %v3559_v60, %v4412_v10  ;;  %v1069_v62 = vpop.f32.mrb[45].mxu0  ;;  %3572 = vmatpush3.bf16.msra.mxu1 %v1108_v56 }
 0x59d   :  { %v1109_v63 = vpack.c.bf16 %v1099_v58, %v1098_v59  ;;  %v1070_v0 = vadd.f32 %v4412_v10, %v1069_v62 }
 0x59e   :  { %v1101_v1 = vmax.f32 %v1075_v61, 0.0 }
 0x59f   :  { %v1100_v2 = vmax.f32 %v1070_v0, 0.0  ;;  %v3562_v3 = vpop.f32.mrb[46].mxu0  ;;  %3573 = vmatprep.subr.bf16.mxu1 %v1109_v63 }
 0x5a0   :  { %v1085_v4 = vadd.f32 %v3562_v3, %v4412_v10  ;;  %v1079_v5 = vpop.f32.mrb[47].mxu0  ;;  %3574 = vmatpush3.bf16.msra.mxu1 %v1109_v63 }
 0x5a1   :  { %v1110_v6 = vpack.c.bf16 %v1101_v1, %v1100_v2  ;;  %v1080_v7 = vadd.f32 %v4412_v10, %v1079_v5 }
 0x5a2   :  { %v1103_v9 = vmax.f32 %v1085_v4, 0.0 }
 0x5a3   :  { %v1102_v8 = vmax.f32 %v1080_v7, 0.0  ;;  %3575 = vmatprep.subr.bf16.mxu1 %v1110_v6 }
 0x5a4   :  { %3576 = vmatpush3.bf16.msra.mxu1 %v1110_v6 }
 0x5a5   :  { %v1111_v12 = vpack.c.bf16 %v1103_v9, %v1102_v8 }
 0x5a7   :  { %3577 = vmatprep.subr.bf16.mxu1 %v1111_v12 }
 0x5a8   :  { %3578 = vmatpush3.bf16.msra.mxu1 %v1111_v12 }
 0x5ab   :  { %3580 = vmatmul.mubr.bf16.vlgmr.msra.gmra.mrb[48].mxu1 %v4263_v34 }
 0x5ac   :  { %3583 = vmatprep.mubr.bf16.mxu1 %v4268_v35 }
 0x5b3   :  { %3584 = vmatmul.mubr.bf16.gmra.mrb[52].mxu1 %v4275_v36 }
 0x5b4   :  { %3587 = vmatprep.mubr.bf16.mxu1 %v4280_v37 }
 0x5bb   :  { %3588 = vmatmul.mubr.bf16.gmra.mrb[56].mxu1 %v4287_v38 }
 0x5bc   :  { %3591 = vmatprep.mubr.bf16.mxu1 %v4292_v39 }
 0x5c3   :  { %3592 = vmatmul.mubr.bf16.gmra.mrb[60].mxu1 %v4299_v40 }
 0x5c4   :  { %3651 = vmatprep.mubr.bf16.mxu1 %v4233_v11 }
 0x67e   :  { %v3581_v10 = vpop.f32.mrb[48].mxu1 }
 0x67f   :  { %v1146_v13 = vpop.f32.mrb[49].mxu1 }
 0x680   :  { %v3582_v14 = vpop.f32.mrb[50].mxu1  ;;  %3611 = vmatprep.mubr.msk.f32.mxu0 %vm232_vm0, %v1146_v13 }
 0x681   :  { %v1149_v34 = vpop.f32.mrb[51].mxu1 }
 0x682   :  { %3612 = vmatmul.mubr.msk.f32.vlgmr.msra.gmra.mrb[48].mxu0 %vm232_vm0, %v1149_v34 }
 0x683   :  { %3614 = vmatprep.mubr.msk.f32.mxu0 %vm232_vm0, %v3581_v10  ;;  %3990 = vmatpush3.bf16.msra.mxu0 %v3987_v23 }
 0x684   :  { %3992 = vmatprep.subr.bf16.mxu0 %v3991_v25 }
 0x686   :  { %v3585_v35 = vpop.f32.mrb[52].mxu1  ;;  %3615 = vmatmul.mubr.msk.f32.gmra.mrb[50].mxu0 %vm232_vm0, %v3582_v14 }
 0x687   :  { %v1162_v36 = vpop.f32.mrb[53].mxu1  ;;  %3994 = vmatpush3.bf16.msra.mxu0 %v3991_v25  ;;  %v4478_v25 = vld [vmem:[%s4776_s0 + $0x8] sm:$0xff]  }
 0x688   :  { %v3586_v37 = vpop.f32.mrb[54].mxu1  ;;  %3617 = vmatprep.mubr.msk.f32.mxu0 %vm232_vm0, %v1162_v36  ;;  %3996 = vmatprep.subr.bf16.mxu0 %v3995_v28 }
 0x689   :  { %v1165_v38 = vpop.f32.mrb[55].mxu1 }
 0x68a   :  { %3618 = vmatmul.mubr.msk.f32.gmra.mrb[52].mxu0 %vm232_vm0, %v1165_v38 }
 0x68b   :  { %3620 = vmatprep.mubr.msk.f32.mxu0 %vm232_vm0, %v3585_v35  ;;  %3998 = vmatpush3.bf16.msra.mxu0 %v3995_v28  ;;  %v4496_v28 = vld [vmem:[%s4776_s0 + $0x20] sm:$0xff]  }
 0x68c   :  { %4000 = vmatprep.subr.bf16.mxu0 %v3999_v31 }
 0x68e   :  { %v3589_v11 = vpop.f32.mrb[56].mxu1  ;;  %3621 = vmatmul.mubr.msk.f32.gmra.mrb[54].mxu0 %vm232_vm0, %v3586_v37 }
 0x68f   :  { %v1178_v39 = vpop.f32.mrb[57].mxu1  ;;  %4002 = vmatpush3.bf16.msra.mxu0 %v3999_v31  ;;  %v4514_v31 = vld [vmem:[%s4776_s0 + $0x38] sm:$0xff]  }
 0x690   :  { %v3590_v40 = vpop.f32.mrb[58].mxu1  ;;  %3623 = vmatprep.mubr.msk.f32.mxu0 %vm232_vm0, %v1178_v39 }
 0x691   :  { %v1181_v15 = vpop.f32.mrb[59].mxu1 }
 0x692   :  { %3624 = vmatmul.mubr.msk.f32.gmra.mrb[56].mxu0 %vm232_vm0, %v1181_v15 }
 0x693   :  { %3626 = vmatprep.mubr.msk.f32.mxu0 %vm232_vm0, %v3589_v11 }
 0x696   :  { %v3593_v16 = vpop.f32.mrb[60].mxu1  ;;  %3627 = vmatmul.mubr.msk.f32.gmra.mrb[58].mxu0 %vm232_vm0, %v3590_v40 }
 0x697   :  { %v1194_v17 = vpop.f32.mrb[61].mxu1 }
 0x698   :  { %v3594_v18 = vpop.f32.mrb[62].mxu1  ;;  %3629 = vmatprep.mubr.msk.f32.mxu0 %vm232_vm0, %v1194_v17 }
 0x699   :  { %v1197_v19 = vpop.f32.mrb[63].mxu1 }
 0x69a   :  { %3630 = vmatmul.mubr.msk.f32.gmra.mrb[60].mxu0 %vm232_vm0, %v1197_v19 }
 0x69b   :  { %3632 = vmatprep.mubr.msk.f32.mxu0 %vm232_vm0, %v3593_v16 }
 0x69e   :  { %3633 = vmatmul.mubr.msk.f32.gmra.mrb[62].mxu0 %vm232_vm0, %v3594_v18 }
 0x755   :  { %v3613_v33 = vpop.f32.mrb[48].mxu0 }
 0x756   :  { %v1346_v41 = vadd.f32 %v3613_v33, %v4457_v32  ;;  %v1340_v42 = vpop.f32.mrb[49].mxu0 }
 0x757   :  { %v1341_v43 = vadd.f32 %v4457_v32, %v1340_v42 }
 0x758   :  { %v1420_v44 = vmax.f32 %v1346_v41, 0.0 }
 0x759   :  { %v1419_v46 = vmax.f32 %v1341_v43, 0.0  ;;  %v3616_v45 = vpop.f32.mrb[50].mxu0 }
 0x75a   :  { %v1356_v47 = vadd.f32 %v3616_v45, %v4457_v32  ;;  %v1350_v48 = vpop.f32.mrb[51].mxu0 }
 0x75b   :  { %v1435_v49 = vpack.c.bf16 %v1420_v44, %v1419_v46  ;;  %v1351_v50 = vadd.f32 %v4457_v32, %v1350_v48 }
 0x75c   :  { %v1422_v51 = vmax.f32 %v1356_v47, 0.0 }
 0x75d   :  { %v1421_v52 = vmax.f32 %v1351_v50, 0.0  ;;  %v3619_v53 = vpop.f32.mrb[52].mxu0  ;;  %3635 = vmatprep.subr.bf16.mxu1 %v1435_v49 }
 0x75e   :  { %v1366_v54 = vadd.f32 %v3619_v53, %v4457_v32  ;;  %v1360_v55 = vpop.f32.mrb[53].mxu0  ;;  %3636 = vmatpush3.bf16.msra.mxu1 %v1435_v49 }
 0x75f   :  { %v1436_v56 = vpack.c.bf16 %v1422_v51, %v1421_v52  ;;  %v1361_v57 = vadd.f32 %v4457_v32, %v1360_v55 }
 0x760   :  { %v1424_v58 = vmax.f32 %v1366_v54, 0.0 }
 0x761   :  { %v1423_v59 = vmax.f32 %v1361_v57, 0.0  ;;  %v3622_v60 = vpop.f32.mrb[54].mxu0  ;;  %3637 = vmatprep.subr.bf16.mxu1 %v1436_v56  ;;  %v1873_v57 = vld [vmem:[#allocation2 + $0x148] sm:$0xff] }
 0x762   :  { %v1376_v61 = vadd.f32 %v3622_v60, %v4457_v32  ;;  %v1370_v62 = vpop.f32.mrb[55].mxu0  ;;  %3638 = vmatpush3.bf16.msra.mxu1 %v1436_v56  ;;  %v1872_v56 = vld [vmem:[#allocation2 + $0x140] sm:$0xff]  ;;  %v1875_v60 = vld [vmem:[#allocation2 + $0x158] sm:$0xff] }
 0x763   :  { %v1437_v63 = vpack.c.bf16 %v1424_v58, %v1423_v59  ;;  %v1371_v0 = vadd.f32 %v4457_v32, %v1370_v62  ;;  %v1874_v58 = vld [vmem:[#allocation2 + $0x150] sm:$0xff]  ;;  %v4003_v59 = vpack.c.bf16 %v1873_v57, %v1872_v56  ;;  %v1876_v62 = vld [vmem:[#allocation2 + $0x160] sm:$0xff] }
 0x764   :  { %v1426_v1 = vmax.f32 %v1376_v61, 0.0  ;;  %v4007_v61 = vpack.c.bf16 %v1875_v60, %v1874_v58 }
 0x765   :  { %v1425_v2 = vmax.f32 %v1371_v0, 0.0  ;;  %v3625_v3 = vpop.f32.mrb[56].mxu0  ;;  %3639 = vmatprep.subr.bf16.mxu1 %v1437_v63  ;;  %4004 = vmatprep.subr.bf16.mxu0 %v4003_v59 }
 0x766   :  { %v1386_v4 = vadd.f32 %v3625_v3, %v4457_v32  ;;  %v1380_v5 = vpop.f32.mrb[57].mxu0  ;;  %3640 = vmatpush3.bf16.msra.mxu1 %v1437_v63  ;;  %v1877_v63 = vld [vmem:[#allocation2 + $0x168] sm:$0xff] }
 0x767   :  { %v1438_v6 = vpack.c.bf16 %v1426_v1, %v1425_v2  ;;  %v1381_v7 = vadd.f32 %v4457_v32, %v1380_v5  ;;  %v4011_v0 = vpack.c.bf16 %v1877_v63, %v1876_v62  ;;  %v1878_v1 = vld [vmem:[#allocation2 + $0x170] sm:$0xff]  ;;  %v1879_v2 = vld [vmem:[#allocation2 + $0x178] sm:$0xff] }
 0x768   :  { %v1428_v9 = vmax.f32 %v1386_v4, 0.0  ;;  %v4015_v3 = vpack.c.bf16 %v1879_v2, %v1878_v1  ;;  %v4542_v4 = vld [vmem:[%s4779_s3 + $0x4] ss:$0 sm:$0xff] }
 0x769   :  { %v1427_v8 = vmax.f32 %v1381_v7, 0.0  ;;  %v3628_v12 = vpop.f32.mrb[58].mxu0  ;;  %3641 = vmatprep.subr.bf16.mxu1 %v1438_v6 }
 0x76a   :  { %v1396_v10 = vadd.f32 %v3628_v12, %v4457_v32  ;;  %v1390_v13 = vpop.f32.mrb[59].mxu0  ;;  %3642 = vmatpush3.bf16.msra.mxu1 %v1438_v6 }
 0x76b   :  { %v1439_v14 = vpack.c.bf16 %v1428_v9, %v1427_v8  ;;  %v1391_v34 = vadd.f32 %v4457_v32, %v1390_v13 }
 0x76c   :  { %v1430_v35 = vmax.f32 %v1396_v10, 0.0 }
 0x76d   :  { %v1429_v36 = vmax.f32 %v1391_v34, 0.0  ;;  %v3631_v37 = vpop.f32.mrb[60].mxu0  ;;  %3643 = vmatprep.subr.bf16.mxu1 %v1439_v14 }
 0x76e   :  { %v1406_v38 = vadd.f32 %v3631_v37, %v4457_v32  ;;  %v1400_v11 = vpop.f32.mrb[61].mxu0  ;;  %3644 = vmatpush3.bf16.msra.mxu1 %v1439_v14 }
 0x76f   :  { %v1440_v39 = vpack.c.bf16 %v1430_v35, %v1429_v36  ;;  %v1401_v40 = vadd.f32 %v4457_v32, %v1400_v11 }
 0x770   :  { %v1432_v15 = vmax.f32 %v1406_v38, 0.0 }
 0x771   :  { %v1431_v16 = vmax.f32 %v1401_v40, 0.0  ;;  %v3634_v17 = vpop.f32.mrb[62].mxu0  ;;  %3645 = vmatprep.subr.bf16.mxu1 %v1440_v39 }
 0x772   :  { %v1416_v18 = vadd.f32 %v3634_v17, %v4457_v32  ;;  %v1410_v19 = vpop.f32.mrb[63].mxu0  ;;  %3646 = vmatpush3.bf16.msra.mxu1 %v1440_v39 }
 0x773   :  { %v1441_v20 = vpack.c.bf16 %v1432_v15, %v1431_v16  ;;  %v1411_v21 = vadd.f32 %v4457_v32, %v1410_v19  ;;  %v4520_v32 = vld [vmem:[%s4776_s0] sm:$0xff]  }
 0x774   :  { %v1434_v22 = vmax.f32 %v1416_v18, 0.0 }
 0x775   :  { %v1433_v23 = vmax.f32 %v1411_v21, 0.0  ;;  %3647 = vmatprep.subr.bf16.mxu1 %v1441_v20 }
 0x776   :  { %3648 = vmatpush3.bf16.msra.mxu1 %v1441_v20 }
 0x777   :  { %v1442_v24 = vpack.c.bf16 %v1434_v22, %v1433_v23 }
 0x779   :  { %3649 = vmatprep.subr.bf16.mxu1 %v1442_v24 }
 0x77a   :  { %3650 = vmatpush3.bf16.msra.mxu1 %v1442_v24 }
 0x77d   :  { %3652 = vmatmul.mubr.bf16.vlgmr.msra.gmra.mrb[64].mxu1 %v4478_v25 }
 0x77e   :  { %3655 = vmatprep.mubr.bf16.mxu1 %v4484_v26 }
 0x785   :  { %3656 = vmatmul.mubr.bf16.gmra.mrb[68].mxu1 %v4490_v27 }
 0x786   :  { %3659 = vmatprep.mubr.bf16.mxu1 %v4496_v28 }
 0x78d   :  { %3660 = vmatmul.mubr.bf16.gmra.mrb[72].mxu1 %v4502_v29 }
 0x78e   :  { %3663 = vmatprep.mubr.bf16.mxu1 %v4508_v30 }
 0x795   :  { %3664 = vmatmul.mubr.bf16.gmra.mrb[76].mxu1 %v4514_v31 }
 0x796   :  { %3723 = vmatprep.mubr.bf16.mxu1 %v4520_v32 }
 0x850   :  { %v3653_v33 = vpop.f32.mrb[64].mxu1 }
 0x851   :  { %v1477_v41 = vpop.f32.mrb[65].mxu1 }
 0x852   :  { %v3654_v42 = vpop.f32.mrb[66].mxu1  ;;  %3683 = vmatprep.mubr.msk.f32.mxu0 %vm232_vm0, %v1477_v41 }
 0x853   :  { %v1480_v43 = vpop.f32.mrb[67].mxu1 }
 0x854   :  { %3684 = vmatmul.mubr.msk.f32.vlgmr.msra.gmra.mrb[64].mxu0 %vm232_vm0, %v1480_v43 }
 0x855   :  { %3686 = vmatprep.mubr.msk.f32.mxu0 %vm232_vm0, %v3653_v33  ;;  %4006 = vmatpush3.bf16.msra.mxu0 %v4003_v59 }
 0x856   :  { %4008 = vmatprep.subr.bf16.mxu0 %v4007_v61 }
 0x858   :  { %v3657_v44 = vpop.f32.mrb[68].mxu1  ;;  %3687 = vmatmul.mubr.msk.f32.gmra.mrb[66].mxu0 %vm232_vm0, %v3654_v42 }
 0x859   :  { %v1493_v46 = vpop.f32.mrb[69].mxu1  ;;  %4010 = vmatpush3.bf16.msra.mxu0 %v4007_v61 }
 0x85a   :  { %v3658_v45 = vpop.f32.mrb[70].mxu1  ;;  %3689 = vmatprep.mubr.msk.f32.mxu0 %vm232_vm0, %v1493_v46  ;;  %4012 = vmatprep.subr.bf16.mxu0 %v4011_v0 }
 0x85b   :  { %v1496_v47 = vpop.f32.mrb[71].mxu1 }
 0x85c   :  { %3690 = vmatmul.mubr.msk.f32.gmra.mrb[68].mxu0 %vm232_vm0, %v1496_v47 }
 0x85d   :  { %3692 = vmatprep.mubr.msk.f32.mxu0 %vm232_vm0, %v3657_v44  ;;  %4014 = vmatpush3.bf16.msra.mxu0 %v4011_v0 }
 0x85e   :  { %4016 = vmatprep.subr.bf16.mxu0 %v4015_v3 }
 0x860   :  { %v3661_v48 = vpop.f32.mrb[72].mxu1  ;;  %3693 = vmatmul.mubr.msk.f32.gmra.mrb[70].mxu0 %vm232_vm0, %v3658_v45 }
 0x861   :  { %v1509_v49 = vpop.f32.mrb[73].mxu1  ;;  %4018 = vmatpush3.bf16.msra.mxu0 %v4015_v3 }
 0x862   :  { %v3662_v50 = vpop.f32.mrb[74].mxu1  ;;  %3695 = vmatprep.mubr.msk.f32.mxu0 %vm232_vm0, %v1509_v49 }
 0x863   :  { %v1512_v51 = vpop.f32.mrb[75].mxu1 }
 0x864   :  { %3696 = vmatmul.mubr.msk.f32.gmra.mrb[72].mxu0 %vm232_vm0, %v1512_v51 }
 0x865   :  { %3698 = vmatprep.mubr.msk.f32.mxu0 %vm232_vm0, %v3661_v48 }
 0x868   :  { %v3665_v52 = vpop.f32.mrb[76].mxu1  ;;  %3699 = vmatmul.mubr.msk.f32.gmra.mrb[74].mxu0 %vm232_vm0, %v3662_v50 }
 0x869   :  { %v1525_v53 = vpop.f32.mrb[77].mxu1 }
 0x86a   :  { %v3666_v54 = vpop.f32.mrb[78].mxu1  ;;  %3701 = vmatprep.mubr.msk.f32.mxu0 %vm232_vm0, %v1525_v53 }
 0x86b   :  { %v1528_v55 = vpop.f32.mrb[79].mxu1 }
 0x86c   :  { %3702 = vmatmul.mubr.msk.f32.gmra.mrb[76].mxu0 %vm232_vm0, %v1528_v55 }
 0x86d   :  { %3704 = vmatprep.mubr.msk.f32.mxu0 %vm232_vm0, %v3665_v52 }
 0x870   :  { %3705 = vmatmul.mubr.msk.f32.gmra.mrb[78].mxu0 %vm232_vm0, %v3666_v54 }
 0x927   :  { %v3685_v5 = vpop.f32.mrb[64].mxu0 }
 0x928   :  { %v1677_v6 = vadd.f32 %v3685_v5, %v4542_v4  ;;  %v1671_v7 = vpop.f32.mrb[65].mxu0 }
 0x929   :  { %v1672_v9 = vadd.f32 %v4542_v4, %v1671_v7 }
 0x92a   :  { %v1751_v8 = vmax.f32 %v1677_v6, 0.0 }
 0x92b   :  { %v1750_v12 = vmax.f32 %v1672_v9, 0.0  ;;  %v3688_v10 = vpop.f32.mrb[66].mxu0 }
 0x92c   :  { %v1687_v13 = vadd.f32 %v3688_v10, %v4542_v4  ;;  %v1681_v14 = vpop.f32.mrb[67].mxu0 }
 0x92d   :  { %v1766_v34 = vpack.c.bf16 %v1751_v8, %v1750_v12  ;;  %v1682_v35 = vadd.f32 %v4542_v4, %v1681_v14 }
 0x92e   :  { %v1753_v36 = vmax.f32 %v1687_v13, 0.0 }
 0x92f   :  { %v1752_v37 = vmax.f32 %v1682_v35, 0.0  ;;  %v3691_v38 = vpop.f32.mrb[68].mxu0  ;;  %3707 = vmatprep.subr.bf16.mxu1 %v1766_v34 }
 0x930   :  { %v1697_v11 = vadd.f32 %v3691_v38, %v4542_v4  ;;  %v1691_v39 = vpop.f32.mrb[69].mxu0  ;;  %3708 = vmatpush3.bf16.msra.mxu1 %v1766_v34 }
 0x931   :  { %v1767_v40 = vpack.c.bf16 %v1753_v36, %v1752_v37  ;;  %v1692_v15 = vadd.f32 %v4542_v4, %v1691_v39 }
 0x932   :  { %v1755_v16 = vmax.f32 %v1697_v11, 0.0 }
 0x933   :  { %v1754_v17 = vmax.f32 %v1692_v15, 0.0  ;;  %v3694_v18 = vpop.f32.mrb[70].mxu0  ;;  %3709 = vmatprep.subr.bf16.mxu1 %v1767_v40  ;;  %v2204_v15 = vld [vmem:[#allocation2 + $0x188] sm:$0xff] }
 0x934   :  { %v1707_v19 = vadd.f32 %v3694_v18, %v4542_v4  ;;  %v1701_v20 = vpop.f32.mrb[71].mxu0  ;;  %3710 = vmatpush3.bf16.msra.mxu1 %v1767_v40  ;;  %v2203_v40 = vld [vmem:[#allocation2 + $0x180] sm:$0xff]  ;;  %v2206_v18 = vld [vmem:[#allocation2 + $0x198] sm:$0xff] }
 0x935   :  { %v1768_v21 = vpack.c.bf16 %v1755_v16, %v1754_v17  ;;  %v1702_v22 = vadd.f32 %v4542_v4, %v1701_v20  ;;  %v2205_v16 = vld [vmem:[#allocation2 + $0x190] sm:$0xff]  ;;  %v4019_v17 = vpack.c.bf16 %v2204_v15, %v2203_v40  ;;  %v2207_v20 = vld [vmem:[#allocation2 + $0x1a0] sm:$0xff] }
 0x936   :  { %v1757_v23 = vmax.f32 %v1707_v19, 0.0  ;;  %v4023_v19 = vpack.c.bf16 %v2206_v18, %v2205_v16 }
 0x937   :  { %v1756_v24 = vmax.f32 %v1702_v22, 0.0  ;;  %v3697_v33 = vpop.f32.mrb[72].mxu0  ;;  %3711 = vmatprep.subr.bf16.mxu1 %v1768_v21  ;;  %4020 = vmatprep.subr.bf16.mxu0 %v4019_v17 }
 0x938   :  { %v1717_v41 = vadd.f32 %v3697_v33, %v4542_v4  ;;  %v1711_v42 = vpop.f32.mrb[73].mxu0  ;;  %3712 = vmatpush3.bf16.msra.mxu1 %v1768_v21  ;;  %v2208_v21 = vld [vmem:[#allocation2 + $0x1a8] sm:$0xff] }
 0x939   :  { %v1769_v43 = vpack.c.bf16 %v1757_v23, %v1756_v24  ;;  %v1712_v44 = vadd.f32 %v4542_v4, %v1711_v42  ;;  %v4027_v22 = vpack.c.bf16 %v2208_v21, %v2207_v20  ;;  %v2209_v23 = vld [vmem:[#allocation2 + $0x1b0] sm:$0xff]  ;;  %v2210_v24 = vld [vmem:[#allocation2 + $0x1b8] sm:$0xff] }
 0x93a   :  { %v1759_v46 = vmax.f32 %v1717_v41, 0.0  ;;  %v4031_v33 = vpack.c.bf16 %v2210_v24, %v2209_v23  ;;  %v4587_v41 = vld [vmem:[%s4779_s3 + $0x5] ss:$0 sm:$0xff] }
 0x93b   :  { %v1758_v45 = vmax.f32 %v1712_v44, 0.0  ;;  %v3700_v47 = vpop.f32.mrb[74].mxu0  ;;  %3713 = vmatprep.subr.bf16.mxu1 %v1769_v43 }
 0x93c   :  { %v1727_v48 = vadd.f32 %v3700_v47, %v4542_v4  ;;  %v1721_v49 = vpop.f32.mrb[75].mxu0  ;;  %3714 = vmatpush3.bf16.msra.mxu1 %v1769_v43 }
 0x93d   :  { %v1770_v50 = vpack.c.bf16 %v1759_v46, %v1758_v45  ;;  %v1722_v51 = vadd.f32 %v4542_v4, %v1721_v49 }
 0x93e   :  { %v1761_v52 = vmax.f32 %v1727_v48, 0.0 }
 0x93f   :  { %v1760_v53 = vmax.f32 %v1722_v51, 0.0  ;;  %v3703_v54 = vpop.f32.mrb[76].mxu0  ;;  %3715 = vmatprep.subr.bf16.mxu1 %v1770_v50 }
 0x940   :  { %v1737_v55 = vadd.f32 %v3703_v54, %v4542_v4  ;;  %v1731_v56 = vpop.f32.mrb[77].mxu0  ;;  %3716 = vmatpush3.bf16.msra.mxu1 %v1770_v50 }
 0x941   :  { %v1771_v57 = vpack.c.bf16 %v1761_v52, %v1760_v53  ;;  %v1732_v58 = vadd.f32 %v4542_v4, %v1731_v56 }
 0x942   :  { %v1763_v59 = vmax.f32 %v1737_v55, 0.0 }
 0x943   :  { %v1762_v60 = vmax.f32 %v1732_v58, 0.0  ;;  %v3706_v61 = vpop.f32.mrb[78].mxu0  ;;  %3717 = vmatprep.subr.bf16.mxu1 %v1771_v57 }
 0x944   :  { %v1747_v62 = vadd.f32 %v3706_v61, %v4542_v4  ;;  %v1741_v63 = vpop.f32.mrb[79].mxu0  ;;  %3718 = vmatpush3.bf16.msra.mxu1 %v1771_v57 }
 0x945   :  { %v1772_v0 = vpack.c.bf16 %v1763_v59, %v1762_v60  ;;  %v1742_v1 = vadd.f32 %v4542_v4, %v1741_v63 }
 0x946   :  { %v1765_v2 = vmax.f32 %v1747_v62, 0.0 }
 0x947   :  { %v1764_v3 = vmax.f32 %v1742_v1, 0.0  ;;  %3719 = vmatprep.subr.bf16.mxu1 %v1772_v0 }
 0x948   :  { %3720 = vmatpush3.bf16.msra.mxu1 %v1772_v0 }
 0x949   :  { %v1773_v5 = vpack.c.bf16 %v1765_v2, %v1764_v3 }
 0x94b   :  { %3721 = vmatprep.subr.bf16.mxu1 %v1773_v5 }
 0x94c   :  { %3722 = vmatpush3.bf16.msra.mxu1 %v1773_v5 }
 0x94f   :  { %3724 = vmatmul.mubr.bf16.vlgmr.msra.gmra.mrb[80].mxu1 %v4478_v25 }
 0x950   :  { %3727 = vmatprep.mubr.bf16.mxu1 %v4484_v26 }
 0x957   :  { %3728 = vmatmul.mubr.bf16.gmra.mrb[84].mxu1 %v4490_v27 }
 0x958   :  { %3731 = vmatprep.mubr.bf16.mxu1 %v4496_v28 }
 0x95f   :  { %3732 = vmatmul.mubr.bf16.gmra.mrb[88].mxu1 %v4502_v29 }
 0x960   :  { %3735 = vmatprep.mubr.bf16.mxu1 %v4508_v30 }
 0x967   :  { %3736 = vmatmul.mubr.bf16.gmra.mrb[92].mxu1 %v4514_v31 }
 0x968   :  { %3795 = vmatprep.mubr.bf16.mxu1 %v4520_v32 }
 0xa22   :  { %v3725_v4 = vpop.f32.mrb[80].mxu1 }
 0xa23   :  { %v1808_v6 = vpop.f32.mrb[81].mxu1 }
 0xa24   :  { %v3726_v7 = vpop.f32.mrb[82].mxu1  ;;  %3755 = vmatprep.mubr.msk.f32.mxu0 %vm232_vm0, %v1808_v6 }
 0xa25   :  { %v1811_v9 = vpop.f32.mrb[83].mxu1 }
 0xa26   :  { %3756 = vmatmul.mubr.msk.f32.vlgmr.msra.gmra.mrb[80].mxu0 %vm232_vm0, %v1811_v9 }
 0xa27   :  { %3758 = vmatprep.mubr.msk.f32.mxu0 %vm232_vm0, %v3725_v4  ;;  %4022 = vmatpush3.bf16.msra.mxu0 %v4019_v17 }
 0xa28   :  { %4024 = vmatprep.subr.bf16.mxu0 %v4023_v19 }
 0xa2a   :  { %v3729_v8 = vpop.f32.mrb[84].mxu1  ;;  %3759 = vmatmul.mubr.msk.f32.gmra.mrb[82].mxu0 %vm232_vm0, %v3726_v7 }
 0xa2b   :  { %v1824_v12 = vpop.f32.mrb[85].mxu1  ;;  %4026 = vmatpush3.bf16.msra.mxu0 %v4023_v19 }
 0xa2c   :  { %v3730_v10 = vpop.f32.mrb[86].mxu1  ;;  %3761 = vmatprep.mubr.msk.f32.mxu0 %vm232_vm0, %v1824_v12  ;;  %4028 = vmatprep.subr.bf16.mxu0 %v4027_v22 }
 0xa2d   :  { %v1827_v13 = vpop.f32.mrb[87].mxu1 }
 0xa2e   :  { %3762 = vmatmul.mubr.msk.f32.gmra.mrb[84].mxu0 %vm232_vm0, %v1827_v13 }
 0xa2f   :  { %3764 = vmatprep.mubr.msk.f32.mxu0 %vm232_vm0, %v3729_v8  ;;  %4030 = vmatpush3.bf16.msra.mxu0 %v4027_v22 }
 0xa30   :  { %4032 = vmatprep.subr.bf16.mxu0 %v4031_v33 }
 0xa32   :  { %v3733_v14 = vpop.f32.mrb[88].mxu1  ;;  %3765 = vmatmul.mubr.msk.f32.gmra.mrb[86].mxu0 %vm232_vm0, %v3730_v10 }
 0xa33   :  { %v1840_v34 = vpop.f32.mrb[89].mxu1  ;;  %4034 = vmatpush3.bf16.msra.mxu0 %v4031_v33 }
 0xa34   :  { %v3734_v35 = vpop.f32.mrb[90].mxu1  ;;  %3767 = vmatprep.mubr.msk.f32.mxu0 %vm232_vm0, %v1840_v34 }
 0xa35   :  { %v1843_v36 = vpop.f32.mrb[91].mxu1 }
 0xa36   :  { %3768 = vmatmul.mubr.msk.f32.gmra.mrb[88].mxu0 %vm232_vm0, %v1843_v36 }
 0xa37   :  { %3770 = vmatprep.mubr.msk.f32.mxu0 %vm232_vm0, %v3733_v14 }
 0xa3a   :  { %v3737_v37 = vpop.f32.mrb[92].mxu1  ;;  %3771 = vmatmul.mubr.msk.f32.gmra.mrb[90].mxu0 %vm232_vm0, %v3734_v35 }
 0xa3b   :  { %v1856_v38 = vpop.f32.mrb[93].mxu1 }
 0xa3c   :  { %v3738_v11 = vpop.f32.mrb[94].mxu1  ;;  %3773 = vmatprep.mubr.msk.f32.mxu0 %vm232_vm0, %v1856_v38 }
 0xa3d   :  { %v1859_v39 = vpop.f32.mrb[95].mxu1 }
 0xa3e   :  { %3774 = vmatmul.mubr.msk.f32.gmra.mrb[92].mxu0 %vm232_vm0, %v1859_v39 }
 0xa3f   :  { %3776 = vmatprep.mubr.msk.f32.mxu0 %vm232_vm0, %v3737_v37 }
 0xa42   :  { %3777 = vmatmul.mubr.msk.f32.gmra.mrb[94].mxu0 %vm232_vm0, %v3738_v11 }
 0xaf9   :  { %v3757_v42 = vpop.f32.mrb[80].mxu0 }
 0xafa   :  { %v2008_v43 = vadd.f32 %v3757_v42, %v4587_v41  ;;  %v2002_v44 = vpop.f32.mrb[81].mxu0 }
 0xafb   :  { %v2003_v46 = vadd.f32 %v4587_v41, %v2002_v44 }
 0xafc   :  { %v2082_v45 = vmax.f32 %v2008_v43, 0.0 }
 0xafd   :  { %v2081_v47 = vmax.f32 %v2003_v46, 0.0  ;;  %v3760_v48 = vpop.f32.mrb[82].mxu0 }
 0xafe   :  { %v2018_v49 = vadd.f32 %v3760_v48, %v4587_v41  ;;  %v2012_v50 = vpop.f32.mrb[83].mxu0 }
 0xaff   :  { %v2097_v51 = vpack.c.bf16 %v2082_v45, %v2081_v47  ;;  %v2013_v52 = vadd.f32 %v4587_v41, %v2012_v50 }
 0xb00   :  { %v2084_v53 = vmax.f32 %v2018_v49, 0.0 }
 0xb01   :  { %v2083_v54 = vmax.f32 %v2013_v52, 0.0  ;;  %v3763_v55 = vpop.f32.mrb[84].mxu0  ;;  %3779 = vmatprep.subr.bf16.mxu1 %v2097_v51 }
 0xb02   :  { %v2028_v56 = vadd.f32 %v3763_v55, %v4587_v41  ;;  %v2022_v57 = vpop.f32.mrb[85].mxu0  ;;  %3780 = vmatpush3.bf16.msra.mxu1 %v2097_v51 }
 0xb03   :  { %v2098_v58 = vpack.c.bf16 %v2084_v53, %v2083_v54  ;;  %v2023_v59 = vadd.f32 %v4587_v41, %v2022_v57  ;;  %v2534_v57 = vld [vmem:[#allocation2 + $0x1c0] sm:$0xff] }
 0xb04   :  { %v2086_v60 = vmax.f32 %v2028_v56, 0.0 }
 0xb05   :  { %v2085_v61 = vmax.f32 %v2023_v59, 0.0  ;;  %v3766_v62 = vpop.f32.mrb[86].mxu0  ;;  %3781 = vmatprep.subr.bf16.mxu1 %v2098_v58  ;;  %v2536_v59 = vld [vmem:[#allocation2 + $0x1d0] sm:$0xff] }
 0xb06   :  { %v2038_v63 = vadd.f32 %v3766_v62, %v4587_v41  ;;  %v2032_v0 = vpop.f32.mrb[87].mxu0  ;;  %3782 = vmatpush3.bf16.msra.mxu1 %v2098_v58  ;;  %v2535_v58 = vld [vmem:[#allocation2 + $0x1c8] sm:$0xff] }
 0xb07   :  { %v2099_v1 = vpack.c.bf16 %v2086_v60, %v2085_v61  ;;  %v2033_v2 = vadd.f32 %v4587_v41, %v2032_v0  ;;  %v4629_v60 = vpack.c.bf16 %v2535_v58, %v2534_v57  ;;  %v2537_v61 = vld [vmem:[#allocation2 + $0x1d8] sm:$0xff]  ;;  %v2539_v0 = vld [vmem:[#allocation2 + $0x1e8] sm:$0xff] }
 0xb08   :  { %v2088_v3 = vmax.f32 %v2038_v63, 0.0  ;;  %v4631_v62 = vpack.c.bf16 %v2537_v61, %v2536_v59  ;;  %v2538_v63 = vld [vmem:[#allocation2 + $0x1e0] sm:$0xff] }
 0xb09   :  { %v2087_v5 = vmax.f32 %v2033_v2, 0.0  ;;  %v3769_v4 = vpop.f32.mrb[88].mxu0  ;;  %3783 = vmatprep.subr.bf16.mxu1 %v2099_v1  ;;  %4036 = vmatprep.subr.bf16.mxu0 %v4629_v60  ;;  %v4644_v2 = vld [vmem:[%s4779_s3 + $0x6] ss:$0 sm:$0xff] }
 0xb0a   :  { %v2048_v6 = vadd.f32 %v3769_v4, %v4587_v41  ;;  %v2042_v7 = vpop.f32.mrb[89].mxu0  ;;  %3784 = vmatpush3.bf16.msra.mxu1 %v2099_v1  ;;  %v4636_v1 = vpack.c.bf16 %v2539_v0, %v2538_v63 }
 0xb0b   :  { %v2100_v9 = vpack.c.bf16 %v2088_v3, %v2087_v5  ;;  %v2043_v8 = vadd.f32 %v4587_v41, %v2042_v7 }
 0xb0c   :  { %v2090_v12 = vmax.f32 %v2048_v6, 0.0 }
 0xb0d   :  { %v2089_v10 = vmax.f32 %v2043_v8, 0.0  ;;  %v3772_v13 = vpop.f32.mrb[90].mxu0  ;;  %3785 = vmatprep.subr.bf16.mxu1 %v2100_v9 }
 0xb0e   :  { %v2058_v14 = vadd.f32 %v3772_v13, %v4587_v41  ;;  %v2052_v34 = vpop.f32.mrb[91].mxu0  ;;  %3786 = vmatpush3.bf16.msra.mxu1 %v2100_v9 }
 0xb0f   :  { %v2101_v35 = vpack.c.bf16 %v2090_v12, %v2089_v10  ;;  %v2053_v36 = vadd.f32 %v4587_v41, %v2052_v34 }
 0xb10   :  { %v2092_v37 = vmax.f32 %v2058_v14, 0.0 }
 0xb11   :  { %v2091_v38 = vmax.f32 %v2053_v36, 0.0  ;;  %v3775_v11 = vpop.f32.mrb[92].mxu0  ;;  %3787 = vmatprep.subr.bf16.mxu1 %v2101_v35 }
 0xb12   :  { %v2068_v39 = vadd.f32 %v3775_v11, %v4587_v41  ;;  %v2062_v40 = vpop.f32.mrb[93].mxu0  ;;  %3788 = vmatpush3.bf16.msra.mxu1 %v2101_v35 }
 0xb13   :  { %v2102_v15 = vpack.c.bf16 %v2092_v37, %v2091_v38  ;;  %v2063_v16 = vadd.f32 %v4587_v41, %v2062_v40 }
 0xb14   :  { %v2094_v17 = vmax.f32 %v2068_v39, 0.0 }
 0xb15   :  { %v2093_v18 = vmax.f32 %v2063_v16, 0.0  ;;  %v3778_v19 = vpop.f32.mrb[94].mxu0  ;;  %3789 = vmatprep.subr.bf16.mxu1 %v2102_v15 }
 0xb16   :  { %v2078_v20 = vadd.f32 %v3778_v19, %v4587_v41  ;;  %v2072_v21 = vpop.f32.mrb[95].mxu0  ;;  %3790 = vmatpush3.bf16.msra.mxu1 %v2102_v15 }
 0xb17   :  { %v2103_v22 = vpack.c.bf16 %v2094_v17, %v2093_v18  ;;  %v2073_v23 = vadd.f32 %v4587_v41, %v2072_v21 }
 0xb18   :  { %v2096_v24 = vmax.f32 %v2078_v20, 0.0 }
 0xb19   :  { %v2095_v33 = vmax.f32 %v2073_v23, 0.0  ;;  %3791 = vmatprep.subr.bf16.mxu1 %v2103_v22 }
 0xb1a   :  { %3792 = vmatpush3.bf16.msra.mxu1 %v2103_v22 }
 0xb1b   :  { %v2104_v42 = vpack.c.bf16 %v2096_v24, %v2095_v33 }
 0xb1d   :  { %3793 = vmatprep.subr.bf16.mxu1 %v2104_v42 }
 0xb1e   :  { %3794 = vmatpush3.bf16.msra.mxu1 %v2104_v42 }
 0xb21   :  { %3796 = vmatmul.mubr.bf16.vlgmr.msra.gmra.mrb[96].mxu1 %v4478_v25 }
 0xb22   :  { %3799 = vmatprep.mubr.bf16.mxu1 %v4484_v26 }
 0xb29   :  { %3800 = vmatmul.mubr.bf16.gmra.mrb[100].mxu1 %v4490_v27 }
 0xb2a   :  { %3803 = vmatprep.mubr.bf16.mxu1 %v4496_v28 }
 0xb31   :  { %3804 = vmatmul.mubr.bf16.gmra.mrb[104].mxu1 %v4502_v29 }
 0xb32   :  { %3807 = vmatprep.mubr.bf16.mxu1 %v4508_v30 }
 0xb39   :  { %3808 = vmatmul.mubr.bf16.gmra.mrb[108].mxu1 %v4514_v31 }
 0xb3a   :  { %3867 = vmatprep.mubr.bf16.mxu1 %v4520_v32 }
 0xbf4   :  { %v3797_v41 = vpop.f32.mrb[96].mxu1 }
 0xbf5   :  { %v2139_v43 = vpop.f32.mrb[97].mxu1 }
 0xbf6   :  { %v3798_v44 = vpop.f32.mrb[98].mxu1  ;;  %3827 = vmatprep.mubr.msk.f32.mxu0 %vm232_vm0, %v2139_v43 }
 0xbf7   :  { %v2142_v46 = vpop.f32.mrb[99].mxu1 }
 0xbf8   :  { %3828 = vmatmul.mubr.msk.f32.vlgmr.msra.gmra.mrb[96].mxu0 %vm232_vm0, %v2142_v46 }
 0xbf9   :  { %3830 = vmatprep.mubr.msk.f32.mxu0 %vm232_vm0, %v3797_v41  ;;  %4038 = vmatpush3.bf16.msra.mxu0 %v4629_v60 }
 0xbfa   :  { %4040 = vmatprep.subr.bf16.mxu0 %v4631_v62 }
 0xbfc   :  { %v3801_v45 = vpop.f32.mrb[100].mxu1  ;;  %3831 = vmatmul.mubr.msk.f32.gmra.mrb[98].mxu0 %vm232_vm0, %v3798_v44 }
 0xbfd   :  { %v2155_v47 = vpop.f32.mrb[101].mxu1  ;;  %4042 = vmatpush3.bf16.msra.mxu0 %v4631_v62 }
 0xbfe   :  { %v3802_v48 = vpop.f32.mrb[102].mxu1  ;;  %3833 = vmatprep.mubr.msk.f32.mxu0 %vm232_vm0, %v2155_v47  ;;  %4044 = vmatprep.subr.bf16.mxu0 %v4636_v1 }
 0xbff   :  { %v2158_v49 = vpop.f32.mrb[103].mxu1 }
 0xc00   :  { %3834 = vmatmul.mubr.msk.f32.gmra.mrb[100].mxu0 %vm232_vm0, %v2158_v49 }
 0xc01   :  { %3836 = vmatprep.mubr.msk.f32.mxu0 %vm232_vm0, %v3801_v45  ;;  %4046 = vmatpush3.bf16.msra.mxu0 %v4636_v1 }
 0xc04   :  { %v3805_v32 = vpop.f32.mrb[104].mxu1  ;;  %3837 = vmatmul.mubr.msk.f32.gmra.mrb[102].mxu0 %vm232_vm0, %v3802_v48 }
 0xc05   :  { %v2171_v50 = vpop.f32.mrb[105].mxu1 }
 0xc06   :  { %v3806_v51 = vpop.f32.mrb[106].mxu1  ;;  %3839 = vmatprep.mubr.msk.f32.mxu0 %vm232_vm0, %v2171_v50 }
 0xc07   :  { %v2174_v52 = vpop.f32.mrb[107].mxu1 }
 0xc08   :  { %3840 = vmatmul.mubr.msk.f32.gmra.mrb[104].mxu0 %vm232_vm0, %v2174_v52 }
 0xc09   :  { %3842 = vmatprep.mubr.msk.f32.mxu0 %vm232_vm0, %v3805_v32 }
 0xc0c   :  { %v3809_v53 = vpop.f32.mrb[108].mxu1  ;;  %3843 = vmatmul.mubr.msk.f32.gmra.mrb[106].mxu0 %vm232_vm0, %v3806_v51 }
 0xc0d   :  { %v2187_v54 = vpop.f32.mrb[109].mxu1 }
 0xc0e   :  { %v3810_v55 = vpop.f32.mrb[110].mxu1  ;;  %3845 = vmatprep.mubr.msk.f32.mxu0 %vm232_vm0, %v2187_v54 }
 0xc0f   :  { %v2190_v56 = vpop.f32.mrb[111].mxu1 }
 0xc10   :  { %3846 = vmatmul.mubr.msk.f32.gmra.mrb[108].mxu0 %vm232_vm0, %v2190_v56 }
 0xc11   :  { %3848 = vmatprep.mubr.msk.f32.mxu0 %vm232_vm0, %v3809_v53 }
 0xc14   :  { %3849 = vmatmul.mubr.msk.f32.gmra.mrb[110].mxu0 %vm232_vm0, %v3810_v55 }
 0xccb   :  { %v3829_v3 = vpop.f32.mrb[96].mxu0 }
 0xccc   :  { %v2339_v5 = vadd.f32 %v3829_v3, %v4644_v2  ;;  %v2333_v4 = vpop.f32.mrb[97].mxu0 }
 0xccd   :  { %v2334_v6 = vadd.f32 %v4644_v2, %v2333_v4 }
 0xcce   :  { %v2413_v7 = vmax.f32 %v2339_v5, 0.0 }
 0xccf   :  { %v2412_v9 = vmax.f32 %v2334_v6, 0.0  ;;  %v3832_v8 = vpop.f32.mrb[98].mxu0 }
 0xcd0   :  { %v2349_v12 = vadd.f32 %v3832_v8, %v4644_v2  ;;  %v2343_v10 = vpop.f32.mrb[99].mxu0 }
 0xcd1   :  { %v2428_v13 = vpack.c.bf16 %v2413_v7, %v2412_v9  ;;  %v2344_v14 = vadd.f32 %v4644_v2, %v2343_v10 }
 0xcd2   :  { %v2415_v34 = vmax.f32 %v2349_v12, 0.0 }
 0xcd3   :  { %v2414_v35 = vmax.f32 %v2344_v14, 0.0  ;;  %v3835_v36 = vpop.f32.mrb[100].mxu0  ;;  %3851 = vmatprep.subr.bf16.mxu1 %v2428_v13 }
 0xcd4   :  { %v2359_v37 = vadd.f32 %v3835_v36, %v4644_v2  ;;  %v2353_v38 = vpop.f32.mrb[101].mxu0  ;;  %3852 = vmatpush3.bf16.msra.mxu1 %v2428_v13 }
 0xcd5   :  { %v2429_v11 = vpack.c.bf16 %v2415_v34, %v2414_v35  ;;  %v2354_v39 = vadd.f32 %v4644_v2, %v2353_v38  ;;  %v4694_v34 = vld [vmem:[%s4779_s3 + $0x7] ss:$0 sm:$0xff] }
 0xcd6   :  { %v2417_v40 = vmax.f32 %v2359_v37, 0.0 }
 0xcd7   :  { %v2416_v15 = vmax.f32 %v2354_v39, 0.0  ;;  %v3838_v16 = vpop.f32.mrb[102].mxu0  ;;  %3853 = vmatprep.subr.bf16.mxu1 %v2429_v11 }
 0xcd8   :  { %v2369_v17 = vadd.f32 %v3838_v16, %v4644_v2  ;;  %v2363_v18 = vpop.f32.mrb[103].mxu0  ;;  %3854 = vmatpush3.bf16.msra.mxu1 %v2429_v11 }
 0xcd9   :  { %v2430_v19 = vpack.c.bf16 %v2417_v40, %v2416_v15  ;;  %v2364_v20 = vadd.f32 %v4644_v2, %v2363_v18 }
 0xcda   :  { %v2419_v21 = vmax.f32 %v2369_v17, 0.0 }
 0xcdb   :  { %v2418_v22 = vmax.f32 %v2364_v20, 0.0  ;;  %v3841_v23 = vpop.f32.mrb[104].mxu0  ;;  %3855 = vmatprep.subr.bf16.mxu1 %v2430_v19 }
 0xcdc   :  { %v2379_v24 = vadd.f32 %v3841_v23, %v4644_v2  ;;  %v2373_v33 = vpop.f32.mrb[105].mxu0  ;;  %3856 = vmatpush3.bf16.msra.mxu1 %v2430_v19 }
 0xcdd   :  { %v2431_v42 = vpack.c.bf16 %v2419_v21, %v2418_v22  ;;  %v2374_v41 = vadd.f32 %v4644_v2, %v2373_v33 }
 0xcde   :  { %v2421_v43 = vmax.f32 %v2379_v24, 0.0 }
 0xcdf   :  { %v2420_v44 = vmax.f32 %v2374_v41, 0.0  ;;  %v3844_v46 = vpop.f32.mrb[106].mxu0  ;;  %3857 = vmatprep.subr.bf16.mxu1 %v2431_v42 }
 0xce0   :  { %v2389_v45 = vadd.f32 %v3844_v46, %v4644_v2  ;;  %v2383_v47 = vpop.f32.mrb[107].mxu0  ;;  %3858 = vmatpush3.bf16.msra.mxu1 %v2431_v42 }
 0xce1   :  { %v2432_v48 = vpack.c.bf16 %v2421_v43, %v2420_v44  ;;  %v2384_v49 = vadd.f32 %v4644_v2, %v2383_v47 }
 0xce2   :  { %v2423_v32 = vmax.f32 %v2389_v45, 0.0 }
 0xce3   :  { %v2422_v50 = vmax.f32 %v2384_v49, 0.0  ;;  %v3847_v51 = vpop.f32.mrb[108].mxu0  ;;  %3859 = vmatprep.subr.bf16.mxu1 %v2432_v48 }
 0xce4   :  { %v2399_v52 = vadd.f32 %v3847_v51, %v4644_v2  ;;  %v2393_v53 = vpop.f32.mrb[109].mxu0  ;;  %3860 = vmatpush3.bf16.msra.mxu1 %v2432_v48 }
 0xce5   :  { %v2433_v54 = vpack.c.bf16 %v2423_v32, %v2422_v50  ;;  %v2394_v55 = vadd.f32 %v4644_v2, %v2393_v53 }
 0xce6   :  { %v2425_v56 = vmax.f32 %v2399_v52, 0.0 }
 0xce7   :  { %v2424_v57 = vmax.f32 %v2394_v55, 0.0  ;;  %v3850_v58 = vpop.f32.mrb[110].mxu0  ;;  %3861 = vmatprep.subr.bf16.mxu1 %v2433_v54 }
 0xce8   :  { %v2409_v59 = vadd.f32 %v3850_v58, %v4644_v2  ;;  %v2403_v61 = vpop.f32.mrb[111].mxu0  ;;  %3862 = vmatpush3.bf16.msra.mxu1 %v2433_v54 }
 0xce9   :  { %v2434_v63 = vpack.c.bf16 %v2425_v56, %v2424_v57  ;;  %v2404_v0 = vadd.f32 %v4644_v2, %v2403_v61 }
 0xcea   :  { %v2427_v3 = vmax.f32 %v2409_v59, 0.0 }
 0xceb   :  { %v2426_v5 = vmax.f32 %v2404_v0, 0.0  ;;  %3863 = vmatprep.subr.bf16.mxu1 %v2434_v63 }
 0xcec   :  { %3864 = vmatpush3.bf16.msra.mxu1 %v2434_v63 }
 0xced   :  { %v2435_v4 = vpack.c.bf16 %v2427_v3, %v2426_v5 }
 0xcef   :  { %3865 = vmatprep.subr.bf16.mxu1 %v2435_v4 }
 0xcf0   :  { %3866 = vmatpush3.bf16.msra.mxu1 %v2435_v4 }
 0xcf1   :  { %4051 = vmatprep.subr.bf16.mxu1 %v4629_v60 }
 0xcf3   :  { %3868 = vmatmul.mubr.bf16.vlgmr.msra.gmra.mrb[112].mxu1 %v4478_v25  ;;  %v2540_v25 = vld [vmem:[#allocation2 + $0x1f0] sm:$0xff] }
 0xcf4   :  { %3871 = vmatprep.mubr.bf16.mxu1 %v4484_v26  ;;  %4055 = vmatpush3.bf16.msra.mxu1 %v4629_v60  ;;  %v2541_v26 = vld [vmem:[#allocation2 + $0x1f8] sm:$0xff] }
 0xcf5   :  { %4052 = vmatprep.subr.bf16.mxu1 %v4631_v62  ;;  %v4047_v60 = vpack.c.bf16 %v2541_v26, %v2540_v25 }
 0xcf7   :  { %4048 = vmatprep.subr.bf16.mxu0 %v4047_v60 }
 0xcf8   :  { %4056 = vmatpush3.bf16.msra.mxu1 %v4631_v62  ;;  %4050 = vmatpush3.bf16.msra.mxu0 %v4047_v60 }
 0xcf9   :  { %4053 = vmatprep.subr.bf16.mxu1 %v4636_v1 }
 0xcfb   :  { %3872 = vmatmul.mubr.bf16.gmra.mrb[116].mxu1 %v4490_v27 }
 0xcfc   :  { %3875 = vmatprep.mubr.bf16.mxu1 %v4496_v28  ;;  %4057 = vmatpush3.bf16.msra.mxu1 %v4636_v1 }
 0xcfd   :  { %4054 = vmatprep.subr.bf16.mxu1 %v4047_v60 }
 0xd00   :  { %4058 = vmatpush3.bf16.msra.mxu1 %v4047_v60 }
 0xd03   :  { %3876 = vmatmul.mubr.bf16.gmra.mrb[120].mxu1 %v4502_v29 }
 0xd04   :  { %3879 = vmatprep.mubr.bf16.mxu1 %v4508_v30 }
 0xd0b   :  { %3880 = vmatmul.mubr.bf16.gmra.mrb[124].mxu1 %v4514_v31 }
 0xdc6   :  { %v3869_v62 = vpop.f32.mrb[112].mxu1 }
 0xdc7   :  { %v2470_v2 = vpop.f32.mrb[113].mxu1 }
 0xdc8   :  { %v3870_v27 = vpop.f32.mrb[114].mxu1  ;;  %3899 = vmatprep.mubr.msk.f32.mxu0 %vm232_vm0, %v2470_v2 }
 0xdc9   :  { %v2473_v28 = vpop.f32.mrb[115].mxu1 }
 0xdca   :  { %3900 = vmatmul.mubr.msk.f32.vlgmr.msra.gmra.mrb[112].mxu0 %vm232_vm0, %v2473_v28 }
 0xdcb   :  { %3902 = vmatprep.mubr.msk.f32.mxu0 %vm232_vm0, %v3869_v62 }
 0xdce   :  { %v3873_v29 = vpop.f32.mrb[116].mxu1  ;;  %3903 = vmatmul.mubr.msk.f32.gmra.mrb[114].mxu0 %vm232_vm0, %v3870_v27 }
 0xdcf   :  { %v2486_v30 = vpop.f32.mrb[117].mxu1 }
 0xdd0   :  { %v3874_v31 = vpop.f32.mrb[118].mxu1  ;;  %3905 = vmatprep.mubr.msk.f32.mxu0 %vm232_vm0, %v2486_v30 }
 0xdd1   :  { %v2489_v1 = vpop.f32.mrb[119].mxu1 }
 0xdd2   :  { %3906 = vmatmul.mubr.msk.f32.gmra.mrb[116].mxu0 %vm232_vm0, %v2489_v1 }
 0xdd3   :  { %3908 = vmatprep.mubr.msk.f32.mxu0 %vm232_vm0, %v3873_v29 }
 0xdd6   :  { %v3877_v6 = vpop.f32.mrb[120].mxu1  ;;  %3909 = vmatmul.mubr.msk.f32.gmra.mrb[118].mxu0 %vm232_vm0, %v3874_v31 }
 0xdd7   :  { %v2502_v7 = vpop.f32.mrb[121].mxu1 }
 0xdd8   :  { %v3878_v9 = vpop.f32.mrb[122].mxu1  ;;  %3911 = vmatprep.mubr.msk.f32.mxu0 %vm232_vm0, %v2502_v7 }
 0xdd9   :  { %v2505_v8 = vpop.f32.mrb[123].mxu1 }
 0xdda   :  { %3912 = vmatmul.mubr.msk.f32.gmra.mrb[120].mxu0 %vm232_vm0, %v2505_v8 }
 0xddb   :  { %3914 = vmatprep.mubr.msk.f32.mxu0 %vm232_vm0, %v3877_v6 }
 0xdde   :  { %v3881_v12 = vpop.f32.mrb[124].mxu1  ;;  %3915 = vmatmul.mubr.msk.f32.gmra.mrb[122].mxu0 %vm232_vm0, %v3878_v9 }
 0xddf   :  { %v2518_v10 = vpop.f32.mrb[125].mxu1 }
 0xde0   :  { %v3882_v13 = vpop.f32.mrb[126].mxu1  ;;  %3917 = vmatprep.mubr.msk.f32.mxu1 %vm232_vm0, %v2518_v10 }
 0xde1   :  { %v2521_v14 = vpop.f32.mrb[127].mxu1 }
 0xde2   :  { %3918 = vmatmul.mubr.msk.f32.vlgmr.msra.gmra.mrb[128].mxu1 %vm232_vm0, %v2521_v14 }
 0xde3   :  { %3920 = vmatprep.mubr.msk.f32.mxu1 %vm232_vm0, %v3881_v12 }
 0xde6   :  { %3921 = vmatmul.mubr.msk.f32.gmra.mrb[130].mxu1 %vm232_vm0, %v3882_v13 }
 0xe9d   :  { %v3901_v35 = vpop.f32.mrb[112].mxu0 }
 0xe9e   :  { %v2670_v36 = vadd.f32 %v3901_v35, %v4694_v34  ;;  %v2664_v37 = vpop.f32.mrb[113].mxu0 }
 0xe9f   :  { %v2665_v38 = vadd.f32 %v4694_v34, %v2664_v37 }
 0xea0   :  { %v3012_v11 = vmul.f32 -1.442695, %v2670_v36 }
 0xea1   :  { %v3011_v39 = vmul.f32 -1.442695, %v2665_v38  ;;  %v3904_v40 = vpop.f32.mrb[114].mxu0 }
 0xea2   :  { %4070 = vpow2.f32 %v3012_v11  ;;  %v2680_v15 = vadd.f32 %v3904_v40, %v4694_v34  ;;  %v2674_v16 = vpop.f32.mrb[115].mxu0 }
 0xea3   :  { %4072 = vpow2.f32 %v3011_v39  ;;  %v2675_v17 = vadd.f32 %v4694_v34, %v2674_v16 }
 0xea4   :  { %v3014_v18 = vmul.f32 -1.442695, %v2680_v15 }
 0xea5   :  { %v3013_v19 = vmul.f32 -1.442695, %v2675_v17  ;;  %v3907_v20 = vpop.f32.mrb[116].mxu0 }
 0xea6   :  { %4074 = vpow2.f32 %v3014_v18  ;;  %v2690_v21 = vadd.f32 %v3907_v20, %v4694_v34  ;;  %v2684_v22 = vpop.f32.mrb[117].mxu0 }
 0xea7   :  { %4076 = vpow2.f32 %v3013_v19  ;;  %v2685_v23 = vadd.f32 %v4694_v34, %v2684_v22 }
 0xea8   :  { %v3016_v24 = vmul.f32 -1.442695, %v2690_v21 }
 0xea9   :  { %v3015_v33 = vmul.f32 -1.442695, %v2685_v23  ;;  %v3910_v42 = vpop.f32.mrb[118].mxu0 }
 0xeaa   :  { %4078 = vpow2.f32 %v3016_v24  ;;  %v2700_v41 = vadd.f32 %v3910_v42, %v4694_v34  ;;  %v2694_v43 = vpop.f32.mrb[119].mxu0 }
 0xeab   :  { %4080 = vpow2.f32 %v3015_v33  ;;  %v2695_v44 = vadd.f32 %v4694_v34, %v2694_v43 }
 0xeac   :  { %v4071_v46 = vpop.eup %4070  ;;  %v3018_v45 = vmul.f32 -1.442695, %v2700_v41 }
 0xead   :  { %v4073_v47 = vpop.eup %4072  ;;  %v2792_v48 = vadd.f32 1.0, %v4071_v46  ;;  %v3017_v49 = vmul.f32 -1.442695, %v2695_v44  ;;  %v3913_v32 = vpop.f32.mrb[120].mxu0 }
 0xeae   :  { %v2791_v50 = vadd.f32 1.0, %v4073_v47  ;;  %4082 = vpow2.f32 %v3018_v45  ;;  %v2710_v51 = vadd.f32 %v3913_v32, %v4694_v34  ;;  %v2704_v52 = vpop.f32.mrb[121].mxu0 }
 0xeaf   :  { %4084 = vrcp.f32 %v2792_v48  ;;  %v2705_v53 = vadd.f32 %v4694_v34, %v2704_v52 }
 0xeb0   :  { %v4075_v54 = vpop.eup %4074  ;;  %4086 = vrcp.f32 %v2791_v50  ;;  %v3020_v55 = vmul.f32 -1.442695, %v2710_v51 }
 0xeb1   :  { %v4077_v56 = vpop.eup %4076  ;;  %v2794_v57 = vadd.f32 1.0, %v4075_v54  ;;  %4088 = vpow2.f32 %v3017_v49  ;;  %v3019_v58 = vmul.f32 -1.442695, %v2705_v53  ;;  %v3916_v59 = vpop.f32.mrb[122].mxu0 }
 0xeb2   :  { %v2793_v61 = vadd.f32 1.0, %v4077_v56  ;;  %4090 = vpow2.f32 %v3020_v55  ;;  %v2720_v63 = vadd.f32 %v3916_v59, %v4694_v34  ;;  %v2714_v0 = vpop.f32.mrb[123].mxu0 }
 0xeb3   :  { %4092 = vrcp.f32 %v2794_v57  ;;  %v2715_v3 = vadd.f32 %v4694_v34, %v2714_v0 }
 0xeb4   :  { %v4079_v5 = vpop.eup %4078  ;;  %4094 = vrcp.f32 %v2793_v61  ;;  %v3022_v4 = vmul.f32 -1.442695, %v2720_v63 }
 0xeb5   :  { %v4081_v25 = vpop.eup %4080  ;;  %v2796_v26 = vadd.f32 1.0, %v4079_v5  ;;  %4096 = vpow2.f32 %v3019_v58  ;;  %v3021_v60 = vmul.f32 -1.442695, %v2715_v3  ;;  %v3919_v62 = vpop.f32.mrb[128].mxu1 }
 0xeb6   :  { %v2795_v2 = vadd.f32 1.0, %v4081_v25  ;;  %4098 = vpow2.f32 %v3022_v4  ;;  %v2730_v27 = vadd.f32 %v3919_v62, %v4694_v34  ;;  %v2724_v28 = vpop.f32.mrb[129].mxu1 }
 0xeb7   :  { %4100 = vrcp.f32 %v2796_v26  ;;  %v2725_v29 = vadd.f32 %v4694_v34, %v2724_v28 }
 0xeb8   :  { %v4083_v30 = vpop.eup %4082  ;;  %4102 = vrcp.f32 %v2795_v2  ;;  %v3024_v31 = vmul.f32 -1.442695, %v2730_v27 }
 0xeb9   :  { %v4085_v1 = vpop.eup %4084  ;;  %v2798_v6 = vadd.f32 1.0, %v4083_v30  ;;  %4104 = vpow2.f32 %v3021_v60  ;;  %v3023_v7 = vmul.f32 -1.442695, %v2725_v29  ;;  %v3922_v9 = vpop.f32.mrb[130].mxu1 }
 0xeba   :  { %v4087_v8 = vpop.eup %4086  ;;  %2840 = vst.msk [vmem:[%s4780_s4 + $0x8] sm:$0xff] %vm232_vm0, %v4085_v1  ;;  %4106 = vpow2.f32 %v3024_v31  ;;  %v2740_v12 = vadd.f32 %v3922_v9, %v4694_v34  ;;  %v2734_v10 = vpop.f32.mrb[131].mxu1 }
 0xebb   :  { %v4089_v13 = vpop.eup %4088  ;;  %2839 = vst.msk [vmem:[%s4780_s4] sm:$0xff] %vm232_vm0, %v4087_v8  ;;  %4108 = vrcp.f32 %v2798_v6  ;;  %v2735_v14 = vadd.f32 %v4694_v34, %v2734_v10 }
 0xebc   :  { %v4091_v35 = vpop.eup %4090  ;;  %v2797_v36 = vadd.f32 1.0, %v4089_v13  ;;  %4110 = vpow2.f32 %v3023_v7  ;;  %v3026_v37 = vmul.f32 -1.442695, %v2740_v12 }
 0xebd   :  { %v4093_v38 = vpop.eup %4092  ;;  %v2800_v11 = vadd.f32 1.0, %v4091_v35  ;;  %v3025_v39 = vmul.f32 -1.442695, %v2735_v14 }
 0xebe   :  { %v4095_v40 = vpop.eup %4094  ;;  %2842 = vst.msk [vmem:[%s4780_s4 + $0x18] sm:$0xff] %vm232_vm0, %v4093_v38  ;;  %4112 = vrcp.f32 %v2797_v36 }
 0xebf   :  { %v4097_v15 = vpop.eup %4096  ;;  %2841 = vst.msk [vmem:[%s4780_s4 + $0x10] sm:$0xff] %vm232_vm0, %v4095_v40  ;;  %4114 = vrcp.f32 %v2800_v11 }
 0xec0   :  { %v4099_v34 = vpop.eup %4098  ;;  %v2799_v16 = vadd.f32 1.0, %v4097_v15  ;;  %4116 = vpow2.f32 %v3026_v37 }
 0xec1   :  { %v4101_v17 = vpop.eup %4100  ;;  %v2802_v18 = vadd.f32 1.0, %v4099_v34  ;;  %4118 = vpow2.f32 %v3025_v39 }
 0xec2   :  { %v4103_v19 = vpop.eup %4102  ;;  %2844 = vst.msk [vmem:[%s4780_s4 + $0x28] sm:$0xff] %vm232_vm0, %v4101_v17  ;;  %4120 = vrcp.f32 %v2799_v16 }
 0xec3   :  { %v4105_v20 = vpop.eup %4104  ;;  %2843 = vst.msk [vmem:[%s4780_s4 + $0x20] sm:$0xff] %vm232_vm0, %v4103_v19  ;;  %4122 = vrcp.f32 %v2802_v18 }
 0xec4   :  { %v4107_v21 = vpop.eup %4106  ;;  %v2801_v22 = vadd.f32 1.0, %v4105_v20 }
 0xec5   :  { %v4109_v23 = vpop.eup %4108  ;;  %v2804_v24 = vadd.f32 1.0, %v4107_v21 }
 0xec6   :  { %v4111_v33 = vpop.eup %4110  ;;  %2846 = vst.msk [vmem:[%s4780_s4 + $0x38] sm:$0xff] %vm232_vm0, %v4109_v23  ;;  %4124 = vrcp.f32 %v2801_v22 }
 0xec7   :  { %4126 = vrcp.f32 %v2804_v24  ;;  %v2803_v42 = vadd.f32 1.0, %v4111_v33 }
 0xec8   :  { %v4113_v41 = vpop.eup %4112 }
 0xec9   :  { %v4115_v43 = vpop.eup %4114  ;;  %2845 = vst.msk [vmem:[%s4780_s4 + $0x30] sm:$0xff] %vm232_vm0, %v4113_v41  ;;  %4128 = vrcp.f32 %v2803_v42 }
 0xeca   :  { %v4117_v44 = vpop.eup %4116  ;;  %2848 = vst.msk [vmem:[%s4780_s4 + $0x48] sm:$0xff] %vm232_vm0, %v4115_v43 }
 0xecb   :  { %v4119_v46 = vpop.eup %4118  ;;  %v2806_v45 = vadd.f32 1.0, %v4117_v44 }
 0xecc   :  { %v4121_v47 = vpop.eup %4120  ;;  %v2805_v48 = vadd.f32 1.0, %v4119_v46 }
 0xecd   :  { %v4123_v49 = vpop.eup %4122  ;;  %2847 = vst.msk [vmem:[%s4780_s4 + $0x40] sm:$0xff] %vm232_vm0, %v4121_v47  ;;  %4130 = vrcp.f32 %v2806_v45 }
 0xece   :  { %2850 = vst.msk [vmem:[%s4780_s4 + $0x58] sm:$0xff] %vm232_vm0, %v4123_v49  ;;  %4132 = vrcp.f32 %v2805_v48 }
 0xed0   :  { %v4125_v32 = vpop.eup %4124 }
 0xed1   :  { %v4127_v50 = vpop.eup %4126  ;;  %2849 = vst.msk [vmem:[%s4780_s4 + $0x50] sm:$0xff] %vm232_vm0, %v4125_v32 }
 0xed2   :  { %2852 = vst.msk [vmem:[%s4780_s4 + $0x68] sm:$0xff] %vm232_vm0, %v4127_v50 }
 0xed3   :  { %v4129_v51 = vpop.eup %4128 }
 0xed4   :  { %2851 = vst.msk [vmem:[%s4780_s4 + $0x60] sm:$0xff] %vm232_vm0, %v4129_v51 }
 0xed7   :  { %v4131_v52 = vpop.eup %4130 }
 0xed8   :  { %v4133_v53 = vpop.eup %4132  ;;  %2854 = vst.msk [vmem:[%s4780_s4 + $0x78] sm:$0xff] %vm232_vm0, %v4131_v52 }
 0xed9   :  { %2853 = vst.msk [vmem:[%s4780_s4 + $0x70] sm:$0xff] %vm232_vm0, %v4133_v53 }
 0xeda   :  { %2859 = vsyncpa [#allocation3], 1 }

</bundles_post_ra>
